<compile_context>
chip_gen: v6e
topology: v6e:2x2x1
jax: 0.10.0
libtpu: 0.0.40
codegen_flags: <defaults>
</compile_context>

<pallas_src>
import functools

import jax
import jax.numpy as jnp
from jax.experimental import pallas as pl
from jax.experimental.pallas import tpu as pltpu


_VMEM_LIMIT = 32 * 1024 * 1024  # safe on v5e/v6e (128 MiB) and v7x (64 MiB)


# ---------------------------------------------------------------------------
# Pallas kernels
# ---------------------------------------------------------------------------
def _conv_matmul_kernel(p_ref, w_ref, b_ref, o_ref):
    # out_tile = relu(patch_tile @ W + b)   (im2col conv, bf16 on MXU, f32 acc)
    acc = jnp.dot(p_ref[...], w_ref[...], preferred_element_type=jnp.float32)
    o_ref[...] = jnp.maximum(acc + b_ref[...], 0.0).astype(o_ref.dtype)


def _conv_gap_kernel(p_ref, w_ref, b_ref, o_ref, *, s_total, tile_s):
    # Fused conv2(+ReLU) + global-average-pool.
    # Grid: (batch [parallel], spatial tiles [arbitrary]); o_ref is the (1,1,C)
    # pooled accumulator, resident across the spatial axis.
    s = pl.program_id(1)

    @pl.when(s == 0)
    def _():
        o_ref[...] = jnp.zeros_like(o_ref)

    y = jnp.dot(p_ref[0], w_ref[...], preferred_element_type=jnp.float32)
    y = jnp.maximum(y + b_ref[...], 0.0)                     # [tile_s, C]

    # Mask rows past the true spatial extent (partial last tile).
    row = s * tile_s + jax.lax.broadcasted_iota(jnp.int32, (tile_s, 1), 0)
    y = jnp.where(row < s_total, y, 0.0)

    o_ref[...] += jnp.sum(y, axis=0, keepdims=True)[None, :, :]

    @pl.when(s == pl.num_programs(1) - 1)
    def _():
        o_ref[...] *= jnp.float32(1.0 / s_total)


def _heads_kernel(pooled_ref, wfc_ref, bfc_ref, wh_ref, bh_ref, o_ref):
    # features = pooled @ Wfc + bfc ; logits = features @ [Wc|Wl|0pad] + bias
    feat = jnp.dot(pooled_ref[...].astype(jnp.bfloat16), wfc_ref[...],
                   preferred_element_type=jnp.float32) + bfc_ref[...]
    logits = jnp.dot(feat.astype(jnp.bfloat16), wh_ref[...],
                     preferred_element_type=jnp.float32) + bh_ref[...]
    o_ref[...] = logits.astype(o_ref.dtype)


# ---------------------------------------------------------------------------
# pallas_call wrappers
# ---------------------------------------------------------------------------
def _conv_matmul(patches, w, b, tile_m):
    """relu(patches @ w + b), tiled over rows.  patches:[M,K] bf16 -> [M,N] bf16."""
    m, k = patches.shape
    n = w.shape[1]
    tile_m = min(tile_m, m)
    grid = (pl.cdiv(m, tile_m),)
    return pl.pallas_call(
        _conv_matmul_kernel,
        grid=grid,
        in_specs=[
            pl.BlockSpec((tile_m, k), lambda i: (i, 0)),
            pl.BlockSpec((k, n), lambda i: (0, 0)),
            pl.BlockSpec((1, n), lambda i: (0, 0)),
        ],
        out_specs=pl.BlockSpec((tile_m, n), lambda i: (i, 0)),
        out_shape=jax.ShapeDtypeStruct((m, n), jnp.bfloat16),
        compiler_params=pltpu.CompilerParams(
            dimension_semantics=("parallel",),
            vmem_limit_bytes=_VMEM_LIMIT),
        cost_estimate=pl.CostEstimate(
            flops=2 * m * k * n,
            transcendentals=0,
            bytes_accessed=2 * m * k + 2 * k * n + 2 * m * n + 4 * n),
    )(patches, w, b)


def _conv_gap(patches_bsk, w, b, tile_s):
    """Fused conv2+ReLU+GAP.  patches:[B,S,K] bf16 -> pooled [B,N] f32."""
    bsz, s_total, k = patches_bsk.shape
    n = w.shape[1]
    tile_s = min(tile_s, s_total)
    grid = (bsz, pl.cdiv(s_total, tile_s))
    kernel = functools.partial(_conv_gap_kernel, s_total=s_total, tile_s=tile_s)
    pooled = pl.pallas_call(
        kernel,
        grid=grid,
        in_specs=[
            pl.BlockSpec((1, tile_s, k), lambda bi, si: (bi, si, 0)),
            pl.BlockSpec((k, n), lambda bi, si: (0, 0)),
            pl.BlockSpec((1, n), lambda bi, si: (0, 0)),
        ],
        out_specs=pl.BlockSpec((1, 1, n), lambda bi, si: (bi, 0, 0)),
        out_shape=jax.ShapeDtypeStruct((bsz, 1, n), jnp.float32),
        compiler_params=pltpu.CompilerParams(
            dimension_semantics=("parallel", "arbitrary"),
            vmem_limit_bytes=_VMEM_LIMIT),
        cost_estimate=pl.CostEstimate(
            flops=2 * bsz * s_total * k * n,
            transcendentals=0,
            bytes_accessed=2 * bsz * s_total * k + 2 * k * n + 4 * bsz * n + 4 * n),
    )(patches_bsk, w, b)
    return pooled.reshape(bsz, n)


def _heads(pooled, wfc, bfc, wh, bh):
    """pooled[B,C2] -> logits[B, 128] (condition|level|zero-pad)."""
    bsz = pooled.shape[0]
    n_out = wh.shape[1]
    return pl.pallas_call(
        _heads_kernel,
        grid=(1,),
        in_specs=[
            pl.BlockSpec(pooled.shape, lambda i: (0, 0)),
            pl.BlockSpec(wfc.shape, lambda i: (0, 0)),
            pl.BlockSpec(bfc.shape, lambda i: (0, 0)),
            pl.BlockSpec(wh.shape, lambda i: (0, 0)),
            pl.BlockSpec(bh.shape, lambda i: (0, 0)),
        ],
        out_specs=pl.BlockSpec((bsz, n_out), lambda i: (0, 0)),
        out_shape=jax.ShapeDtypeStruct((bsz, n_out), jnp.float32),
        compiler_params=pltpu.CompilerParams(
            dimension_semantics=("arbitrary",),
            vmem_limit_bytes=_VMEM_LIMIT),
    )(pooled, wfc, bfc, wh, bh)


# ---------------------------------------------------------------------------
# Model
# ---------------------------------------------------------------------------
class SpineStenosisClassifierPallas:
    """Conv backbone -> 512-d features -> condition & level linear heads."""

    C1, C2, FEAT = 64, 128, 512
    HEAD_PAD = 128          # lane-dense combined head output width
    TILE_M = 256            # conv1 patch-row tile
    TILE_S = 128            # conv2 spatial tile (per batch element)

    def __init__(self, num_conditions, num_levels, key):
        ks = jax.random.split(key, 10)
        s = 0.05
        f32, bf16 = jnp.float32, jnp.bfloat16

        # conv1: 1 -> 64, 7x7, stride 2, pad 3    (weights bf16, bias f32)
        self.w1 = (s * jax.random.normal(ks[0], (1 * 7 * 7, self.C1))).astype(bf16)
        self.b1 = (s * jax.random.normal(ks[1], (1, self.C1))).astype(f32)
        # conv2: 64 -> 128, 3x3, stride 1, pad 1
        self.w2 = (s * jax.random.normal(ks[2], (self.C1 * 3 * 3, self.C2))).astype(bf16)
        self.b2 = (s * jax.random.normal(ks[3], (1, self.C2))).astype(f32)
        # backbone projection: 128 -> 512
        self.wfc = (s * jax.random.normal(ks[4], (self.C2, self.FEAT))).astype(bf16)
        self.bfc = (s * jax.random.normal(ks[5], (1, self.FEAT))).astype(f32)

        # condition_head: Linear(512, num_conditions); level_head: Linear(512, num_levels)
        wc = s * jax.random.normal(ks[6], (self.FEAT, num_conditions))
        bc = s * jax.random.normal(ks[7], (1, num_conditions))
        wl = s * jax.random.normal(ks[8], (self.FEAT, num_levels))
        bl = s * jax.random.normal(ks[9], (1, num_levels))
        # Concatenate the two heads and zero-pad to 128 output lanes so the
        # head matmul's output store is lane-dense; split happens outside.
        n_heads = num_conditions + num_levels
        assert n_heads <= self.HEAD_PAD
        wh = jnp.zeros((self.FEAT, self.HEAD_PAD), f32)
        wh = wh.at[:, :num_conditions].set(wc)
        wh = wh.at[:, num_conditions:n_heads].set(wl)
        bh = jnp.zeros((1, self.HEAD_PAD), f32)
        bh = bh.at[:, :num_conditions].set(bc)
        bh = bh.at[:, num_conditions:n_heads].set(bl)
        self.wh = wh.astype(bf16)
        self.bh = bh.astype(f32)

        self.num_conditions = num_conditions
        self.num_levels = num_levels

    @functools.partial(jax.jit, static_argnums=0)
    def __call__(self, x_nchw):
        b = x_nchw.shape[0]
        x = x_nchw.astype(jnp.bfloat16)

        # ---- conv1 (+ReLU): im2col matmul, tiled over patch rows -----------
        p1 = jax.lax.conv_general_dilated_patches(
            x, (7, 7), (2, 2), ((3, 3), (3, 3)))           # [B, 49, H1, W1]
        _, k1, h1, w1sp = p1.shape
        p1 = jnp.transpose(p1, (0, 2, 3, 1)).reshape(b * h1 * w1sp, k1)
        y1 = _conv_matmul(p1, self.w1, self.b1, self.TILE_M)   # [B*H1*W1, 64] bf16

        # Keep activations channels-last (NHWC) -- no NCHW round trip.
        y1_nhwc = y1.reshape(b, h1, w1sp, self.C1)

        # ---- conv2 (+ReLU) fused with global average pooling ----------------
        p2 = jax.lax.conv_general_dilated_patches(
            y1_nhwc, (3, 3), (1, 1), ((1, 1), (1, 1)),
            dimension_numbers=("NHWC", "HWIO", "NHWC"))    # [B, H1, W1, 576]
        p2 = p2.reshape(b, h1 * w1sp, self.C1 * 9)
        pooled = _conv_gap(p2, self.w2, self.b2, self.TILE_S)  # [B, 128] f32

        # ---- fused 512-d projection + combined (lane-dense) heads -----------
        logits = _heads(pooled, self.wfc, self.bfc, self.wh, self.bh)  # [B, 128]
        nc, nl = self.num_conditions, self.num_levels
        cond_logits = logits[:, :nc]
        lvl_logits = logits[:, nc:nc + nl]
        return cond_logits, lvl_logits


# ---------------------------------------------------------------------------
if __name__ == "__main__":
    key = jax.random.PRNGKey(0)
    k_param, k_input = jax.random.split(key)

    num_conditions, num_levels = 3, 5
    model = SpineStenosisClassifierPallas(num_conditions, num_levels, k_param)

    # NCHW input, 1 channel (as in the reference: in_channels=1), small spatial
    x = jax.random.normal(k_input, (2, 1, 32, 32), dtype=jnp.float32)

    cond_logits, lvl_logits = model(x)
    jax.block_until_ready((cond_logits, lvl_logits))

    assert cond_logits.shape == (2, num_conditions)
    assert lvl_logits.shape == (2, num_levels)
    assert bool(jnp.all(jnp.isfinite(cond_logits)))
    assert bool(jnp.all(jnp.isfinite(lvl_logits)))
    print("KERNEL_OK")
</pallas_src>

<mosaic_0001>
module attributes {stable_mosaic.version = 11 : i64} {
  func.func @_conv_matmul_kernel(%arg0: i32, %arg1: memref<256x49xbf16, #tpu.memory_space<vmem>>, %arg2: memref<49x64xbf16, #tpu.memory_space<vmem>>, %arg3: memref<1x64xf32, #tpu.memory_space<vmem>>, %arg4: memref<256x64xbf16, #tpu.memory_space<vmem>>) attributes {dimension_semantics = [#tpu.dimension_semantics<parallel>], iteration_bounds = array<i64: 2>, scalar_prefetch = 0 : i64, scratch_operands = 0 : i64, tpu.core_type = #tpu.core_type<tc>, window_params = [{transform_indices = @transform_0, window_bounds = array<i64: 256, 49>}, {pipeline_mode = #tpu.pipeline_mode<synchronous>, transform_indices = @transform_1, window_bounds = array<i64: 49, 64>}, {pipeline_mode = #tpu.pipeline_mode<synchronous>, transform_indices = @transform_2, window_bounds = array<i64: 1, 64>}, {transform_indices = @transform_3, window_bounds = array<i64: 256, 64>}]} {
    %c0 = arith.constant 0 : index
    %c0_0 = arith.constant 0 : index
    %0 = vector.load %arg1[%c0, %c0_0] : memref<256x49xbf16, #tpu.memory_space<vmem>>, vector<256x49xbf16>
    %c0_1 = arith.constant 0 : index
    %c0_2 = arith.constant 0 : index
    %1 = vector.load %arg2[%c0_1, %c0_2] : memref<49x64xbf16, #tpu.memory_space<vmem>>, vector<49x64xbf16>
    %cst = arith.constant dense<0.000000e+00> : vector<256x64xf32>
    %2 = tpu.matmul %0, %1, %cst {dimension_numbers = #tpu.dot_dimension_numbers<[1], [0], [0], [1], [0, 0, 1, 1], [], []>} : vector<256x49xbf16>, vector<49x64xbf16>, vector<256x64xf32> -> vector<256x64xf32>
    %c0_3 = arith.constant 0 : index
    %c0_4 = arith.constant 0 : index
    %3 = vector.load %arg3[%c0_3, %c0_4] : memref<1x64xf32, #tpu.memory_space<vmem>>, vector<1x64xf32>
    %4 = vector.broadcast %3 : vector<1x64xf32> to vector<256x64xf32>
    %5 = arith.addf %2, %4 : vector<256x64xf32>
    %cst_5 = arith.constant 0.000000e+00 : f32
    %6 = vector.broadcast %cst_5 : f32 to vector<256x64xf32>
    %7 = arith.maximumf %5, %6 : vector<256x64xf32>
    %8 = arith.truncf %7 : vector<256x64xf32> to vector<256x64xbf16>
    %c0_6 = arith.constant 0 : index
    %c0_7 = arith.constant 0 : index
    %9 = vector.load %arg4[%c0_6, %c0_7] : memref<256x64xbf16, #tpu.memory_space<vmem>>, vector<256x64xbf16>
    tpu.vector_store %arg4[%c0_6, %c0_7], %8 {strides = array<i32>} : memref<256x64xbf16, #tpu.memory_space<vmem>>, vector<256x64xbf16>,
    return
  }
  func.func @transform_0(%arg0: i32) -> (i32, i32) {
    %c0_i32 = arith.constant 0 : i32
    %c0_i32_0 = arith.constant 0 : i32
    return %arg0, %c0_i32 : i32, i32
  }
  func.func @transform_1(%arg0: i32) -> (i32, i32) {
    %c0_i32 = arith.constant 0 : i32
    %c0_i32_0 = arith.constant 0 : i32
    %c0_i32_1 = arith.constant 0 : i32
    return %c0_i32, %c0_i32_0 : i32, i32
  }
  func.func @transform_2(%arg0: i32) -> (i32, i32) {
    %c0_i32 = arith.constant 0 : i32
    %c0_i32_0 = arith.constant 0 : i32
    %c0_i32_1 = arith.constant 0 : i32
    return %c0_i32, %c0_i32_0 : i32, i32
  }
  func.func @transform_3(%arg0: i32) -> (i32, i32) {
    %c0_i32 = arith.constant 0 : i32
    %c0_i32_0 = arith.constant 0 : i32
    return %arg0, %c0_i32 : i32, i32
  }
}

module attributes {stable_mosaic.version = 11 : i64} {
  func.func @_conv_gap_kernel(%arg0: i32, %arg1: i32, %arg2: memref<1x128x576xbf16, #tpu.memory_space<vmem>>, %arg3: memref<576x128xbf16, #tpu.memory_space<vmem>>, %arg4: memref<1x128xf32, #tpu.memory_space<vmem>>, %arg5: memref<1x1x128xf32, #tpu.memory_space<vmem>>) attributes {dimension_semantics = [#tpu.dimension_semantics<parallel>, #tpu.dimension_semantics<arbitrary>], iteration_bounds = array<i64: 2, 2>, scalar_prefetch = 0 : i64, scratch_operands = 0 : i64, tpu.core_type = #tpu.core_type<tc>, window_params = [{transform_indices = @transform_0, window_bounds = array<i64: 1, 128, 576>}, {pipeline_mode = #tpu.pipeline_mode<synchronous>, transform_indices = @transform_1, window_bounds = array<i64: 576, 128>}, {pipeline_mode = #tpu.pipeline_mode<synchronous>, transform_indices = @transform_2, window_bounds = array<i64: 1, 128>}, {transform_indices = @transform_3, window_bounds = array<i64: 1, 1, 128>}]} {
    %c0_i32 = arith.constant 0 : i32
    %0 = arith.cmpi eq, %arg1, %c0_i32 : i32
    %1 = arith.extui %0 : i1 to i32
    %c0_i32_0 = arith.constant 0 : i32
    %2 = arith.cmpi ne, %1, %c0_i32_0 : i32
    scf.if %2 {
      %cst_17 = arith.constant 0.000000e+00 : f32
      %31 = vector.broadcast %cst_17 : f32 to vector<1x1x128xf32>
      %c0_18 = arith.constant 0 : index
      %c0_19 = arith.constant 0 : index
      %c0_20 = arith.constant 0 : index
      %32 = vector.load %arg5[%c0_18, %c0_19, %c0_20] : memref<1x1x128xf32, #tpu.memory_space<vmem>>, vector<1x1x128xf32>
      tpu.vector_store %arg5[%c0_18, %c0_19, %c0_20], %31 {strides = array<i32>} : memref<1x1x128xf32, #tpu.memory_space<vmem>>, vector<1x1x128xf32>,
    } else {
    }
    %c0 = arith.constant 0 : index
    %c0_1 = arith.constant 0 : index
    %c0_2 = arith.constant 0 : index
    %3 = vector.load %arg2[%c0, %c0_1, %c0_2] : memref<1x128x576xbf16, #tpu.memory_space<vmem>>, vector<1x128x576xbf16>
    %4 = vector.shape_cast %3 : vector<1x128x576xbf16> to vector<128x576xbf16>
    %c0_3 = arith.constant 0 : index
    %c0_4 = arith.constant 0 : index
    %5 = vector.load %arg3[%c0_3, %c0_4] : memref<576x128xbf16, #tpu.memory_space<vmem>>, vector<576x128xbf16>
    %cst = arith.constant dense<0.000000e+00> : vector<128x128xf32>
    %6 = tpu.matmul %4, %5, %cst {dimension_numbers = #tpu.dot_dimension_numbers<[1], [0], [0], [1], [0, 0, 1, 1], [], []>} : vector<128x576xbf16>, vector<576x128xbf16>, vector<128x128xf32> -> vector<128x128xf32>
    %c0_5 = arith.constant 0 : index
    %c0_6 = arith.constant 0 : index
    %7 = vector.load %arg4[%c0_5, %c0_6] : memref<1x128xf32, #tpu.memory_space<vmem>>, vector<1x128xf32>
    %8 = vector.broadcast %7 : vector<1x128xf32> to vector<128x128xf32>
    %9 = arith.addf %6, %8 : vector<128x128xf32>
    %cst_7 = arith.constant 0.000000e+00 : f32
    %10 = vector.broadcast %cst_7 : f32 to vector<128x128xf32>
    %11 = arith.maximumf %9, %10 : vector<128x128xf32>
    %c128_i32 = arith.constant 128 : i32
    %12 = arith.muli %arg1, %c128_i32 : i32
    %13 = tpu.iota {dimensions = array<i32: 0>} : vector<128x1xi32>
    %14 = vector.broadcast %12 : i32 to vector<128x1xi32>
    %15 = arith.addi %14, %13 : vector<128x1xi32>
    %c256_i32 = arith.constant 256 : i32
    %16 = vector.broadcast %c256_i32 : i32 to vector<128x1xi32>
    %17 = arith.cmpi slt, %15, %16 : vector<128x1xi32>
    %cst_8 = arith.constant 0.000000e+00 : f32
    %18 = vector.shape_cast %17 : vector<128x1xi1> to vector<128x1xi1>
    %19 = vector.broadcast %18 : vector<128x1xi1> to vector<128x128xi1>
    %20 = vector.broadcast %cst_8 : f32 to vector<128x128xf32>
    %21 = arith.select %19, %11, %20 : vector<128x128xi1>, vector<128x128xf32>
    %c0_9 = arith.constant 0 : index
    %c0_10 = arith.constant 0 : index
    %c0_11 = arith.constant 0 : index
    %22 = vector.load %arg5[%c0_9, %c0_10, %c0_11] : memref<1x1x128xf32, #tpu.memory_space<vmem>>, vector<1x1x128xf32>
    %cst_12 = arith.constant dense<0.000000e+00> : vector<128xf32>
    %23 = vector.multi_reduction <add>, %21, %cst_12 [0] : vector<128x128xf32> to vector<128xf32>
    %24 = vector.shape_cast %23 : vector<128xf32> to vector<1x128xf32>
    %25 = vector.shape_cast %24 : vector<1x128xf32> to vector<1x1x128xf32>
    %26 = arith.addf %22, %25 : vector<1x1x128xf32>
    %c0_13 = arith.constant 0 : index
    %c0_14 = arith.constant 0 : index
    %c0_15 = arith.constant 0 : index
    %27 = vector.load %arg5[%c0_13, %c0_14, %c0_15] : memref<1x1x128xf32, #tpu.memory_space<vmem>>, vector<1x1x128xf32>
    tpu.vector_store %arg5[%c0_13, %c0_14, %c0_15], %26 {strides = array<i32>} : memref<1x1x128xf32, #tpu.memory_space<vmem>>, vector<1x1x128xf32>,
    %c1_i32 = arith.constant 1 : i32
    %28 = arith.cmpi eq, %arg1, %c1_i32 : i32
    %29 = arith.extui %28 : i1 to i32
    %c0_i32_16 = arith.constant 0 : i32
    %30 = arith.cmpi ne, %29, %c0_i32_16 : i32
    scf.if %30 {
      %c0_17 = arith.constant 0 : index
      %c0_18 = arith.constant 0 : index
      %c0_19 = arith.constant 0 : index
      %31 = vector.load %arg5[%c0_17, %c0_18, %c0_19] : memref<1x1x128xf32, #tpu.memory_space<vmem>>, vector<1x1x128xf32>
      %cst_20 = arith.constant 3.906250e-03 : f32
      %32 = vector.broadcast %cst_20 : f32 to vector<1x1x128xf32>
      %33 = arith.mulf %31, %32 : vector<1x1x128xf32>
      %c0_21 = arith.constant 0 : index
      %c0_22 = arith.constant 0 : index
      %c0_23 = arith.constant 0 : index
      %34 = vector.load %arg5[%c0_21, %c0_22, %c0_23] : memref<1x1x128xf32, #tpu.memory_space<vmem>>, vector<1x1x128xf32>
      tpu.vector_store %arg5[%c0_21, %c0_22, %c0_23], %33 {strides = array<i32>} : memref<1x1x128xf32, #tpu.memory_space<vmem>>, vector<1x1x128xf32>,
    } else {
    }
    return
  }
  func.func @transform_0(%arg0: i32, %arg1: i32) -> (i32, i32, i32) {
    %c0_i32 = arith.constant 0 : i32
    %c0_i32_0 = arith.constant 0 : i32
    return %arg0, %arg1, %c0_i32 : i32, i32, i32
  }
  func.func @transform_1(%arg0: i32, %arg1: i32) -> (i32, i32) {
    %c0_i32 = arith.constant 0 : i32
    %c0_i32_0 = arith.constant 0 : i32
    %c0_i32_1 = arith.constant 0 : i32
    return %c0_i32, %c0_i32_0 : i32, i32
  }
  func.func @transform_2(%arg0: i32, %arg1: i32) -> (i32, i32) {
    %c0_i32 = arith.constant 0 : i32
    %c0_i32_0 = arith.constant 0 : i32
    %c0_i32_1 = arith.constant 0 : i32
    return %c0_i32, %c0_i32_0 : i32, i32
  }
  func.func @transform_3(%arg0: i32, %arg1: i32) -> (i32, i32, i32) {
    %c0_i32 = arith.constant 0 : i32
    %c0_i32_0 = arith.constant 0 : i32
    %c0_i32_1 = arith.constant 0 : i32
    return %arg0, %c0_i32, %c0_i32_0 : i32, i32, i32
  }
}

module attributes {stable_mosaic.version = 11 : i64} {
  func.func @_heads_kernel(%arg0: i32, %arg1: memref<2x128xf32, #tpu.memory_space<vmem>>, %arg2: memref<128x512xbf16, #tpu.memory_space<vmem>>, %arg3: memref<1x512xf32, #tpu.memory_space<vmem>>, %arg4: memref<512x128xbf16, #tpu.memory_space<vmem>>, %arg5: memref<1x128xf32, #tpu.memory_space<vmem>>, %arg6: memref<2x128xf32, #tpu.memory_space<vmem>>) attributes {dimension_semantics = [#tpu.dimension_semantics<arbitrary>], iteration_bounds = array<i64: 1>, scalar_prefetch = 0 : i64, scratch_operands = 0 : i64, tpu.core_type = #tpu.core_type<tc>, window_params = [{pipeline_mode = #tpu.pipeline_mode<synchronous>, transform_indices = @transform_0, window_bounds = array<i64: 2, 128>}, {pipeline_mode = #tpu.pipeline_mode<synchronous>, transform_indices = @transform_1, window_bounds = array<i64: 128, 512>}, {pipeline_mode = #tpu.pipeline_mode<synchronous>, transform_indices = @transform_2, window_bounds = array<i64: 1, 512>}, {pipeline_mode = #tpu.pipeline_mode<synchronous>, transform_indices = @transform_3, window_bounds = array<i64: 512, 128>}, {pipeline_mode = #tpu.pipeline_mode<synchronous>, transform_indices = @transform_4, window_bounds = array<i64: 1, 128>}, {pipeline_mode = #tpu.pipeline_mode<synchronous>, transform_indices = @transform_5, window_bounds = array<i64: 2, 128>}]} {
    %c0 = arith.constant 0 : index
    %c0_0 = arith.constant 0 : index
    %0 = vector.load %arg1[%c0, %c0_0] : memref<2x128xf32, #tpu.memory_space<vmem>>, vector<2x128xf32>
    %1 = arith.truncf %0 : vector<2x128xf32> to vector<2x128xbf16>
    %c0_1 = arith.constant 0 : index
    %c0_2 = arith.constant 0 : index
    %2 = vector.load %arg2[%c0_1, %c0_2] : memref<128x512xbf16, #tpu.memory_space<vmem>>, vector<128x512xbf16>
    %cst = arith.constant dense<0.000000e+00> : vector<2x512xf32>
    %3 = tpu.matmul %1, %2, %cst {dimension_numbers = #tpu.dot_dimension_numbers<[1], [0], [0], [1], [0, 0, 1, 1], [], []>} : vector<2x128xbf16>, vector<128x512xbf16>, vector<2x512xf32> -> vector<2x512xf32>
    %c0_3 = arith.constant 0 : index
    %c0_4 = arith.constant 0 : index
    %4 = vector.load %arg3[%c0_3, %c0_4] : memref<1x512xf32, #tpu.memory_space<vmem>>, vector<1x512xf32>
    %5 = vector.broadcast %4 : vector<1x512xf32> to vector<2x512xf32>
    %6 = arith.addf %3, %5 : vector<2x512xf32>
    %7 = arith.truncf %6 : vector<2x512xf32> to vector<2x512xbf16>
    %c0_5 = arith.constant 0 : index
    %c0_6 = arith.constant 0 : index
    %8 = vector.load %arg4[%c0_5, %c0_6] : memref<512x128xbf16, #tpu.memory_space<vmem>>, vector<512x128xbf16>
    %cst_7 = arith.constant dense<0.000000e+00> : vector<2x128xf32>
    %9 = tpu.matmul %7, %8, %cst_7 {dimension_numbers = #tpu.dot_dimension_numbers<[1], [0], [0], [1], [0, 0, 1, 1], [], []>} : vector<2x512xbf16>, vector<512x128xbf16>, vector<2x128xf32> -> vector<2x128xf32>
    %c0_8 = arith.constant 0 : index
    %c0_9 = arith.constant 0 : index
    %10 = vector.load %arg5[%c0_8, %c0_9] : memref<1x128xf32, #tpu.memory_space<vmem>>, vector<1x128xf32>
    %11 = vector.broadcast %10 : vector<1x128xf32> to vector<2x128xf32>
    %12 = arith.addf %9, %11 : vector<2x128xf32>
    %c0_10 = arith.constant 0 : index
    %c0_11 = arith.constant 0 : index
    %13 = vector.load %arg6[%c0_10, %c0_11] : memref<2x128xf32, #tpu.memory_space<vmem>>, vector<2x128xf32>
    tpu.vector_store %arg6[%c0_10, %c0_11], %12 {strides = array<i32>} : memref<2x128xf32, #tpu.memory_space<vmem>>, vector<2x128xf32>,
    return
  }
  func.func @transform_0(%arg0: i32) -> (i32, i32) {
    %c0_i32 = arith.constant 0 : i32
    %c0_i32_0 = arith.constant 0 : i32
    %c0_i32_1 = arith.constant 0 : i32
    return %c0_i32, %c0_i32_0 : i32, i32
  }
  func.func @transform_1(%arg0: i32) -> (i32, i32) {
    %c0_i32 = arith.constant 0 : i32
    %c0_i32_0 = arith.constant 0 : i32
    %c0_i32_1 = arith.constant 0 : i32
    return %c0_i32, %c0_i32_0 : i32, i32
  }
  func.func @transform_2(%arg0: i32) -> (i32, i32) {
    %c0_i32 = arith.constant 0 : i32
    %c0_i32_0 = arith.constant 0 : i32
    %c0_i32_1 = arith.constant 0 : i32
    return %c0_i32, %c0_i32_0 : i32, i32
  }
  func.func @transform_3(%arg0: i32) -> (i32, i32) {
    %c0_i32 = arith.constant 0 : i32
    %c0_i32_0 = arith.constant 0 : i32
    %c0_i32_1 = arith.constant 0 : i32
    return %c0_i32, %c0_i32_0 : i32, i32
  }
  func.func @transform_4(%arg0: i32) -> (i32, i32) {
    %c0_i32 = arith.constant 0 : i32
    %c0_i32_0 = arith.constant 0 : i32
    %c0_i32_1 = arith.constant 0 : i32
    return %c0_i32, %c0_i32_0 : i32, i32
  }
  func.func @transform_5(%arg0: i32) -> (i32, i32) {
    %c0_i32 = arith.constant 0 : i32
    %c0_i32_0 = arith.constant 0 : i32
    %c0_i32_1 = arith.constant 0 : i32
    return %c0_i32, %c0_i32_0 : i32, i32
  }
}

</mosaic_0001>

<bundles_post_ra>
// kernel: a_call__.3
= control target key start
LH: loop header
LB: loop body
LE: loop exit
PB: predicated region body
PF: predicated region fallthrough
CT: control target
= control target key end

     0   :  { %s1025_s12 = smov 0   ;;  %s1198_s0 = inlined_call_operand.vmem [shape: bf16[512,49], index: 0, kind: input, shape index: {}]   ;;  %s1199_s1 = inlined_call_operand.vmem [shape: bf16[49,64], index: 1, kind: input, shape index: {}]   ;;  %s1200_s2 = inlined_call_operand.vmem [shape: f32[1,64], index: 2, kind: input, shape index: {}]   ;;  %s1201_s3 = inlined_call_operand.vmem [shape: bf16[512,64], index: 3, kind: output, shape index: {}]  }
   0x1 LB: > { %s787_s13 = sadd.s32 4294967295, %s1002_s12   ;;  %p791_p0 = scmp.ge.s32.totalorder %s1002_s12, 1  ;;  %s1002_s12 = sphi %s1025_s12, %s13_s12  }
   0x2   : > { %p138_p1 = scmp.lt.s32.totalorder %s1002_s12, 3 }
   0x4   : > { %p139_p2 = pnand %p791_p0, %p138_p1 }
   0x5   : > { %s792_s18 = sshll.u32 (!%p139_p2), %s787_s13, 5 }
   0x6   : > { %142 = sbr.rel (%p139_p2) target bundleno = 262 (0x106), region = 32  ;;  %p163_p3 = scmp.lt.s32.totalorder (!%p139_p2), %s792_s18, 63 }
   0xb   : > { %v976_v0 = vld [vmem:[%s1199_s1 + $0x18] ss:$0 sps:$4 sm:$0x11]   ;;  %vm371_vm0 = vcmask 1040384   ;;  %v1004_v1 = vmov 0   ;;  %v977_v4 = vld [vmem:[%s1199_s1 + $0x10] sm:$0xff]  }
   0xc   : > { %v373_v2 = vsel %vm371_vm0, 65535, %v1004_v1  ;;  %s1203_s18 = smov (!%p163_p3, %s792_s18), 63  ;;  %v978_v5 = vld [vmem:[%s1199_s1 + $0x8] sm:$0xff]   ;;  %v979_v6 = vld [vmem:[%s1199_s1] sm:$0xff]   ;;  %vm322_vm1 = vcmask 400384   ;;  %vm698_vm2 = vcmask 519168  }
   0xd   : > { %v375_v3 = vand.u32 %v976_v0, %v373_v2  ;;  %s793_s21 = sshll.u32 %s1203_s18, 2  ;;  %v1090_v23 = vld [vmem:[%s1200_s2] ss:$0 sm:$0xff] }
   0xe   : > { %s1053_s26 = scalar_lea.vmem %s1198_s0, %s793_s21  ;;  %s1101_s4 = scalar_lea.vmem %s1201_s3, %s793_s21 }
   0xf   : > { %919 = vmatprep.subr.bf16.mxu0 %v375_v3  ;;  %959 = vmatprep.subr.bf16.mxu1 %v375_v3  ;;  %v980_v7 = vld [vmem:[%s1053_s26] sm:$0xff]   ;;  %v982_v9 = vld [vmem:[%s1053_s26 + $0x8] sm:$0xff]   ;;  %v984_v11 = vld [vmem:[%s1053_s26 + $0x10] sm:$0xff]  }
  0x10   : > { %920 = vmatpush3.bf16.msra.mxu0 %v375_v3  ;;  %963 = vmatpush3.bf16.msra.mxu1 %v375_v3  ;;  %v981_v8 = vld [vmem:[%s1053_s26 + $0x40] sm:$0xff]   ;;  %v983_v10 = vld [vmem:[%s1053_s26 + $0x48] sm:$0xff]   ;;  %v985_v12 = vld [vmem:[%s1053_s26 + $0x50] sm:$0xff]  }
  0x11   : > { %921 = vmatprep.subr.bf16.mxu0 %v977_v4  ;;  %960 = vmatprep.subr.bf16.mxu1 %v977_v4  ;;  %v986_v13 = vld [vmem:[%s1053_s26 + $0x18] sm:$0xff]   ;;  %v988_v15 = vld [vmem:[%s1053_s26 + $0x20] sm:$0xff]   ;;  %v990_v17 = vld [vmem:[%s1053_s26 + $0x28] sm:$0xff]  }
  0x12   : > { %927 = vmatprep.mubr.msk.bf16.mxu0 %vm322_vm1, %v980_v7  ;;  %943 = vmatprep.mubr.msk.bf16.mxu1 %vm322_vm1, %v981_v8  ;;  %v987_v14 = vld [vmem:[%s1053_s26 + $0x58] sm:$0xff]   ;;  %v989_v16 = vld [vmem:[%s1053_s26 + $0x60] sm:$0xff]   ;;  %v991_v18 = vld [vmem:[%s1053_s26 + $0x68] sm:$0xff]  }
  0x13   : > { %v992_v19 = vld [vmem:[%s1053_s26 + $0x30] sm:$0xff]   ;;  %v994_v21 = vld [vmem:[%s1053_s26 + $0x38] sm:$0xff]  }
  0x14   : > { %922 = vmatpush3.bf16.msra.mxu0 %v977_v4  ;;  %964 = vmatpush3.bf16.msra.mxu1 %v977_v4  ;;  %v993_v20 = vld [vmem:[%s1053_s26 + $0x70] sm:$0xff]   ;;  %v995_v22 = vld [vmem:[%s1053_s26 + $0x78] sm:$0xff]  }
  0x15   : > { %923 = vmatprep.subr.bf16.mxu0 %v978_v5  ;;  %961 = vmatprep.subr.bf16.mxu1 %v978_v5 }
  0x18   : > { %924 = vmatpush3.bf16.msra.mxu0 %v978_v5  ;;  %965 = vmatpush3.bf16.msra.mxu1 %v978_v5 }
  0x19   : > { %925 = vmatprep.subr.bf16.mxu0 %v979_v6  ;;  %962 = vmatprep.subr.bf16.mxu1 %v979_v6 }
  0x1c   : > { %926 = vmatpush3.bf16.msra.mxu0 %v979_v6  ;;  %966 = vmatpush3.bf16.msra.mxu1 %v979_v6 }
  0x1f   : > { %928 = vmatmul.mubr.msk.bf16.vlgmr.msra.gmra.mxu0 %vm322_vm1, %v982_v9  ;;  %944 = vmatmul.mubr.msk.bf16.vlgmr.msra.gmra.mxu1 %vm322_vm1, %v983_v10 }
  0x20   : > { %931 = vmatprep.mubr.msk.bf16.mxu0 %vm322_vm1, %v984_v11  ;;  %947 = vmatprep.mubr.msk.bf16.mxu1 %vm322_vm1, %v985_v12 }
  0x27   : > { %932 = vmatmul.mubr.msk.bf16.gmra.mxu0 %vm322_vm1, %v986_v13  ;;  %948 = vmatmul.mubr.msk.bf16.gmra.mxu1 %vm322_vm1, %v987_v14 }
  0x28   : > { %935 = vmatprep.mubr.msk.bf16.mxu0 %vm322_vm1, %v988_v15  ;;  %951 = vmatprep.mubr.msk.bf16.mxu1 %vm322_vm1, %v989_v16 }
  0x2f   : > { %936 = vmatmul.mubr.msk.bf16.gmra.mxu0 %vm322_vm1, %v990_v17  ;;  %952 = vmatmul.mubr.msk.bf16.gmra.mxu1 %vm322_vm1, %v991_v18 }
  0x30   : > { %939 = vmatprep.mubr.msk.bf16.mxu0 %vm322_vm1, %v992_v19  ;;  %955 = vmatprep.mubr.msk.bf16.mxu1 %vm322_vm1, %v993_v20 }
  0x37   : > { %940 = vmatmul.mubr.msk.bf16.gmra.mxu0 %vm322_vm1, %v994_v21  ;;  %956 = vmatmul.mubr.msk.bf16.gmra.mxu1 %vm322_vm1, %v995_v22 }
  0xdf   : > { %v929_v24 = vpop.f32.mrf.mxu0  ;;  %v945_v25 = vpop.f32.mrf.mxu1 }
  0xe0   : > { %v420_v26 = vadd.f32 %v929_v24, %v1090_v23  ;;  %v484_v27 = vadd.f32 %v945_v25, %v1090_v23 }
  0xe1   : > { %v411_v28 = vpop.f32.mrf.mxu0  ;;  %v475_v29 = vpop.f32.mrf.mxu1 }
  0xe2   : > { %v540_v30 = vmax.f32 %v420_v26, 0.0  ;;  %v556_v31 = vmax.f32 %v484_v27, 0.0  ;;  %v412_v32 = vadd.f32 %v1090_v23, %v411_v28  ;;  %v476_v33 = vadd.f32 %v1090_v23, %v475_v29 }
  0xe3   : > { %v930_v34 = vpop.f32.mrf.mxu0  ;;  %v946_v35 = vpop.f32.mrf.mxu1 }
  0xe4   : > { %v869_v36 = vpack.c.bf16 %v540_v30, %v540_v30  ;;  %v885_v37 = vpack.c.bf16 %v556_v31, %v556_v31  ;;  %v538_v38 = vmax.f32 %v412_v32, 0.0  ;;  %v554_v39 = vmax.f32 %v476_v33, 0.0 }
  0xe5   : > { %v423_v40 = vadd.f32 %v930_v34, %v1090_v23  ;;  %v487_v41 = vadd.f32 %v946_v35, %v1090_v23  ;;  %v414_v42 = vpop.f32.mrf.mxu0  ;;  %v478_v43 = vpop.f32.mrf.mxu1 }
  0xe6   : > { %701 = vst.msk [vmem:[%s1101_s4 + $0x8] sm:$0xf] %vm698_vm2, %v869_v36  ;;  %717 = vst.msk [vmem:[%s1101_s4 + $0x48] sm:$0xf] %vm698_vm2, %v885_v37  ;;  %v867_v44 = vpack.c.bf16 %v538_v38, %v538_v38  ;;  %v883_v45 = vpack.c.bf16 %v554_v39, %v554_v39  ;;  %v415_v46 = vadd.f32 %v1090_v23, %v414_v42 }
  0xe7   : > { %v479_v47 = vadd.f32 %v1090_v23, %v478_v43  ;;  %v541_v48 = vmax.f32 %v423_v40, 0.0  ;;  %v557_v49 = vmax.f32 %v487_v41, 0.0  ;;  %v933_v50 = vpop.f32.mrf.mxu0  ;;  %v949_v51 = vpop.f32.mrf.mxu1 }
  0xe8   : > { %699 = vst.msk [vmem:[%s1101_s4] sm:$0xf] %vm698_vm2, %v867_v44  ;;  %715 = vst.msk [vmem:[%s1101_s4 + $0x40] sm:$0xf] %vm698_vm2, %v883_v45  ;;  %v539_v52 = vmax.f32 %v415_v46, 0.0  ;;  %v436_v54 = vadd.f32 %v933_v50, %v1090_v23  ;;  %v500_v55 = vadd.f32 %v949_v51, %v1090_v23 }
  0xe9   : > { %v555_v53 = vmax.f32 %v479_v47, 0.0  ;;  %v870_v56 = vpack.c.bf16 %v541_v48, %v541_v48  ;;  %v886_v57 = vpack.c.bf16 %v557_v49, %v557_v49  ;;  %v427_v58 = vpop.f32.mrf.mxu0  ;;  %v491_v59 = vpop.f32.mrf.mxu1 }
  0xea   : > { %v868_v60 = vpack.c.bf16 %v539_v52, %v539_v52  ;;  %v544_v62 = vmax.f32 %v436_v54, 0.0  ;;  %v560_v63 = vmax.f32 %v500_v55, 0.0  ;;  %v428_v0 = vadd.f32 %v1090_v23, %v427_v58 }
  0xeb   : > { %v884_v61 = vpack.c.bf16 %v555_v53, %v555_v53  ;;  %702 = vst.msk [vmem:[%s1101_s4 + $0xc] sm:$0xf] %vm698_vm2, %v870_v56  ;;  %718 = vst.msk [vmem:[%s1101_s4 + $0x4c] sm:$0xf] %vm698_vm2, %v886_v57  ;;  %v492_v1 = vadd.f32 %v1090_v23, %v491_v59  ;;  %v934_v2 = vpop.f32.mrf.mxu0  ;;  %v950_v3 = vpop.f32.mrf.mxu1 }
  0xec   : > { %700 = vst.msk [vmem:[%s1101_s4 + $0x4] sm:$0xf] %vm698_vm2, %v868_v60  ;;  %v873_v4 = vpack.c.bf16 %v544_v62, %v544_v62  ;;  %v889_v5 = vpack.c.bf16 %v560_v63, %v560_v63  ;;  %v439_v6 = vadd.f32 %v934_v2, %v1090_v23  ;;  %v503_v7 = vadd.f32 %v950_v3, %v1090_v23 }
  0xed   : > { %716 = vst.msk [vmem:[%s1101_s4 + $0x44] sm:$0xf] %vm698_vm2, %v884_v61  ;;  %v542_v8 = vmax.f32 %v428_v0, 0.0  ;;  %v558_v9 = vmax.f32 %v492_v1, 0.0  ;;  %v430_v10 = vpop.f32.mrf.mxu0  ;;  %v494_v11 = vpop.f32.mrf.mxu1 }
  0xee   : > { %705 = vst.msk [vmem:[%s1101_s4 + $0x18] sm:$0xf] %vm698_vm2, %v873_v4  ;;  %721 = vst.msk [vmem:[%s1101_s4 + $0x58] sm:$0xf] %vm698_vm2, %v889_v5  ;;  %v545_v12 = vmax.f32 %v439_v6, 0.0  ;;  %v561_v13 = vmax.f32 %v503_v7, 0.0  ;;  %v431_v14 = vadd.f32 %v1090_v23, %v430_v10  ;;  %v495_v15 = vadd.f32 %v1090_v23, %v494_v11 }
  0xef   : > { %v871_v16 = vpack.c.bf16 %v542_v8, %v542_v8  ;;  %v887_v17 = vpack.c.bf16 %v558_v9, %v558_v9  ;;  %v937_v18 = vpop.f32.mrf.mxu0  ;;  %v953_v19 = vpop.f32.mrf.mxu1 }
  0xf0   : > { %v874_v20 = vpack.c.bf16 %v545_v12, %v545_v12  ;;  %v890_v21 = vpack.c.bf16 %v561_v13, %v561_v13  ;;  %v543_v22 = vmax.f32 %v431_v14, 0.0  ;;  %v559_v24 = vmax.f32 %v495_v15, 0.0 }
  0xf1   : > { %703 = vst.msk [vmem:[%s1101_s4 + $0x10] sm:$0xf] %vm698_vm2, %v871_v16  ;;  %719 = vst.msk [vmem:[%s1101_s4 + $0x50] sm:$0xf] %vm698_vm2, %v887_v17  ;;  %v452_v25 = vadd.f32 %v937_v18, %v1090_v23  ;;  %v516_v26 = vadd.f32 %v953_v19, %v1090_v23  ;;  %v443_v27 = vpop.f32.mrf.mxu0  ;;  %v507_v28 = vpop.f32.mrf.mxu1 }
  0xf2   : > { %706 = vst.msk [vmem:[%s1101_s4 + $0x1c] sm:$0xf] %vm698_vm2, %v874_v20  ;;  %722 = vst.msk [vmem:[%s1101_s4 + $0x5c] sm:$0xf] %vm698_vm2, %v890_v21  ;;  %v872_v29 = vpack.c.bf16 %v543_v22, %v543_v22  ;;  %v888_v30 = vpack.c.bf16 %v559_v24, %v559_v24  ;;  %v444_v31 = vadd.f32 %v1090_v23, %v443_v27 }
  0xf3   : > { %v508_v32 = vadd.f32 %v1090_v23, %v507_v28  ;;  %v548_v33 = vmax.f32 %v452_v25, 0.0  ;;  %v564_v34 = vmax.f32 %v516_v26, 0.0  ;;  %v938_v35 = vpop.f32.mrf.mxu0  ;;  %v954_v36 = vpop.f32.mrf.mxu1 }
  0xf4   : > { %704 = vst.msk [vmem:[%s1101_s4 + $0x14] sm:$0xf] %vm698_vm2, %v872_v29  ;;  %720 = vst.msk [vmem:[%s1101_s4 + $0x54] sm:$0xf] %vm698_vm2, %v888_v30  ;;  %v546_v37 = vmax.f32 %v444_v31, 0.0  ;;  %v455_v39 = vadd.f32 %v938_v35, %v1090_v23  ;;  %v519_v40 = vadd.f32 %v954_v36, %v1090_v23 }
  0xf5   : > { %v562_v38 = vmax.f32 %v508_v32, 0.0  ;;  %v877_v41 = vpack.c.bf16 %v548_v33, %v548_v33  ;;  %v893_v42 = vpack.c.bf16 %v564_v34, %v564_v34  ;;  %v446_v43 = vpop.f32.mrf.mxu0  ;;  %v510_v44 = vpop.f32.mrf.mxu1 }
  0xf6   : > { %v875_v45 = vpack.c.bf16 %v546_v37, %v546_v37  ;;  %v549_v47 = vmax.f32 %v455_v39, 0.0  ;;  %v565_v48 = vmax.f32 %v519_v40, 0.0  ;;  %v447_v49 = vadd.f32 %v1090_v23, %v446_v43 }
  0xf7   : > { %v891_v46 = vpack.c.bf16 %v562_v38, %v562_v38  ;;  %709 = vst.msk [vmem:[%s1101_s4 + $0x28] sm:$0xf] %vm698_vm2, %v877_v41  ;;  %725 = vst.msk [vmem:[%s1101_s4 + $0x68] sm:$0xf] %vm698_vm2, %v893_v42  ;;  %v511_v50 = vadd.f32 %v1090_v23, %v510_v44  ;;  %v941_v51 = vpop.f32.mrf.mxu0  ;;  %v957_v52 = vpop.f32.mrf.mxu1 }
  0xf8   : > { %707 = vst.msk [vmem:[%s1101_s4 + $0x20] sm:$0xf] %vm698_vm2, %v875_v45  ;;  %v878_v53 = vpack.c.bf16 %v549_v47, %v549_v47  ;;  %v894_v54 = vpack.c.bf16 %v565_v48, %v565_v48  ;;  %v468_v55 = vadd.f32 %v941_v51, %v1090_v23  ;;  %v532_v56 = vadd.f32 %v957_v52, %v1090_v23 }
  0xf9   : > { %723 = vst.msk [vmem:[%s1101_s4 + $0x60] sm:$0xf] %vm698_vm2, %v891_v46  ;;  %v547_v57 = vmax.f32 %v447_v49, 0.0  ;;  %v563_v58 = vmax.f32 %v511_v50, 0.0  ;;  %v459_v59 = vpop.f32.mrf.mxu0  ;;  %v523_v60 = vpop.f32.mrf.mxu1 }
  0xfa   : > { %710 = vst.msk [vmem:[%s1101_s4 + $0x2c] sm:$0xf] %vm698_vm2, %v878_v53  ;;  %726 = vst.msk [vmem:[%s1101_s4 + $0x6c] sm:$0xf] %vm698_vm2, %v894_v54  ;;  %v552_v61 = vmax.f32 %v468_v55, 0.0  ;;  %v568_v62 = vmax.f32 %v532_v56, 0.0  ;;  %v460_v63 = vadd.f32 %v1090_v23, %v459_v59  ;;  %v524_v0 = vadd.f32 %v1090_v23, %v523_v60 }
  0xfb   : > { %v876_v1 = vpack.c.bf16 %v547_v57, %v547_v57  ;;  %v892_v2 = vpack.c.bf16 %v563_v58, %v563_v58  ;;  %v942_v3 = vpop.f32.mrf.mxu0  ;;  %v958_v4 = vpop.f32.mrf.mxu1 }
  0xfc   : > { %v881_v5 = vpack.c.bf16 %v552_v61, %v552_v61  ;;  %v897_v6 = vpack.c.bf16 %v568_v62, %v568_v62  ;;  %v550_v7 = vmax.f32 %v460_v63, 0.0  ;;  %v566_v8 = vmax.f32 %v524_v0, 0.0 }
  0xfd   : > { %708 = vst.msk [vmem:[%s1101_s4 + $0x24] sm:$0xf] %vm698_vm2, %v876_v1  ;;  %724 = vst.msk [vmem:[%s1101_s4 + $0x64] sm:$0xf] %vm698_vm2, %v892_v2  ;;  %v471_v9 = vadd.f32 %v942_v3, %v1090_v23  ;;  %v535_v10 = vadd.f32 %v958_v4, %v1090_v23  ;;  %v462_v11 = vpop.f32.mrf.mxu0  ;;  %v526_v12 = vpop.f32.mrf.mxu1 }
  0xfe   : > { %713 = vst.msk [vmem:[%s1101_s4 + $0x38] sm:$0xf] %vm698_vm2, %v881_v5  ;;  %729 = vst.msk [vmem:[%s1101_s4 + $0x78] sm:$0xf] %vm698_vm2, %v897_v6  ;;  %v879_v13 = vpack.c.bf16 %v550_v7, %v550_v7  ;;  %v895_v14 = vpack.c.bf16 %v566_v8, %v566_v8  ;;  %v463_v15 = vadd.f32 %v1090_v23, %v462_v11 }
  0xff   : > { %v527_v16 = vadd.f32 %v1090_v23, %v526_v12  ;;  %v553_v17 = vmax.f32 %v471_v9, 0.0  ;;  %v569_v18 = vmax.f32 %v535_v10, 0.0 }
 0x100   : > { %711 = vst.msk [vmem:[%s1101_s4 + $0x30] sm:$0xf] %vm698_vm2, %v879_v13  ;;  %727 = vst.msk [vmem:[%s1101_s4 + $0x70] sm:$0xf] %vm698_vm2, %v895_v14  ;;  %v551_v19 = vmax.f32 %v463_v15, 0.0 }
 0x101   : > { %v567_v20 = vmax.f32 %v527_v16, 0.0  ;;  %v882_v21 = vpack.c.bf16 %v553_v17, %v553_v17  ;;  %v898_v22 = vpack.c.bf16 %v569_v18, %v569_v18 }
 0x102   : > { %v880_v24 = vpack.c.bf16 %v551_v19, %v551_v19 }
 0x103   : > { %v896_v25 = vpack.c.bf16 %v567_v20, %v567_v20  ;;  %714 = vst.msk [vmem:[%s1101_s4 + $0x3c] sm:$0xf] %vm698_vm2, %v882_v21  ;;  %730 = vst.msk [vmem:[%s1101_s4 + $0x7c] sm:$0xf] %vm698_vm2, %v898_v22 }
 0x104   : > { %712 = vst.msk [vmem:[%s1101_s4 + $0x34] sm:$0xf] %vm698_vm2, %v880_v24 }
 0x105   : > { %728 = vst.msk [vmem:[%s1101_s4 + $0x74] sm:$0xf] %vm698_vm2, %v896_v25 }
 0x106 PF: > { %s13_s12 = sadd.s32 1, %s1002_s12  }
 0x107   : > { %p10_p4 = scmp.ge.s32.totalorder %s13_s12, 4  }
 0x109   :  { %12 = sbr.rel (!%p10_p4) target bundleno = 1 (0x1), region = 62 }

// kernel: a_call__.4
= control target key start
LH: loop header
LB: loop body
LE: loop exit
PB: predicated region body
PF: predicated region fallthrough
CT: control target
= control target key end

     0   :  { %s1741_s12 = smov 0   ;;  %s1743_s13 = smov 0   ;;  %s2268_s0 = inlined_call_operand.vmem [shape: bf16[2,256,576], index: 0, kind: input, shape index: {}]   ;;  %s2269_s1 = inlined_call_operand.vmem [shape: bf16[576,128], index: 1, kind: input, shape index: {}]   ;;  %s2270_s2 = inlined_call_operand.vmem [shape: f32[1,128], index: 2, kind: input, shape index: {}]   ;;  %s2271_s3 = inlined_call_operand.vmem [shape: f32[2,1,128], index: 3, kind: output, shape index: {}]  }
   0x1   :  { %s1745_s14 = smov 0   ;;  %s1747_s15 = smov 0  }
   0x2   :  { %s1749_s16 = smov 0  }
   0x3 LB: > { %s22_s17 = sadd.s32 1, %s1710_s14  ;;  %s25_s18 = sadd.s32 1, %s1714_s15  ;;  %s1718_s16 = sphi %s1749_s16, %s13_s16   ;;  %s1714_s15 = sphi %s1747_s15, %s2307_s15   ;;  %s1710_s14 = sphi %s1745_s14, %s2306_s14   ;;  %s1706_s13 = sphi %s1743_s13, %s2305_s13   ;;  %s1702_s12 = sphi %s1741_s12, %s2304_s12  }
   0x4   : > { %p23_p0 = scmp.ge.s32.totalorder %s22_s17, 2  ;;  %p1280_p1 = scmp.ge.s32.totalorder %s1718_s16, 1 }
   0x5   : > { %p157_p2 = scmp.lt.s32.totalorder %s1718_s16, 5 }
   0x6   : > { %s2309_s17 = smov (%p23_p0, %s22_s17), 0  ;;  %s2311_s18 = smov (!%p23_p0, %s25_s18), %s1714_s15 }
   0x7   : > { %p158_p3 = pnand %p1280_p1, %p157_p2  ;;  %p27_p4 = scmp.ge.s32.totalorder %s2311_s18, 2 }
   0x9   : > { %s2313_s18 = smov (%p27_p4, %s2311_s18), 0  ;;  %161 = sbr.rel (%p158_p3) target bundleno = 383 (0x17f), region = 32 }
   0xe   : > { %s1281_s19 = sshll.u32 %s1702_s12, 4  ;;  %p185_p5 = scmp.lt.s32.totalorder %s1706_s13, 1 }
   0xf   : > { %p187_p6 = scmp.lt.s32.totalorder %s1281_s19, 31  ;;  %p1283_p7 = scmp.ne.s32.totalorder %s1702_s12, 0 }
  0x10   : > { %s2315_s13 = smov (!%p185_p5, %s1706_s13), 1 }
  0x11   : > { %s2317_s19 = smov (!%p187_p6, %s1281_s19), 31  ;;  %s1546_s20 = smul.u32 160, %s2315_s13 }
  0x12   : > { %s1777_s23 = scalar_lea.vmem %s2271_s3, %s2315_s13  ;;  %s1545_s24 = smul.u32 5, %s2317_s19 }
  0x13   : > { %202 = sbr.rel (%p1283_p7) target bundleno = 26 (0x1a), region = 36 }
  0x14   : > { %s191_s25 = sadd.s32 %s1546_s20, %s1545_s24 }
  0x15   : > { %s1282_s26 = sshll.u32 %s191_s25, 2 }
  0x16   : > { %s1782_s29 = scalar_lea.vmem %s2268_s0, %s1282_s26 }
  0x18   : > { %v1720_v0 = vmov 0.0  }
  0x19   : > { %203 = vst [vmem:[%s1777_s23] sm:$0x1] %v1720_v0 }
  0x1a PF: > { %v1588_v1 = vld [vmem:[%s2269_s1 + $0x78] sm:$0xff]   ;;  %v1592_v5 = vld [vmem:[%s2269_s1 + $0x70] sm:$0xff]   ;;  %v1596_v9 = vld [vmem:[%s2269_s1 + $0x68] sm:$0xff]   ;;  %vm747_vm0 = vcmask 523264   ;;  %p1370_p8 = scmp.ne.s32.totalorder %s1702_s12, 1 }
  0x1b   : > { %v1589_v2 = vld [vmem:[%s2269_s1 + $0xf8] sm:$0xff]   ;;  %1373 = vmatprep.subr.bf16.mxu0 %v1588_v1  ;;  %v1593_v6 = vld [vmem:[%s2269_s1 + $0xf0] sm:$0xff]   ;;  %v1597_v10 = vld [vmem:[%s2269_s1 + $0xe8] sm:$0xff]  }
  0x1c   : > { %v1590_v3 = vld [vmem:[%s2269_s1 + $0x38] sm:$0xff]   ;;  %1437 = vmatprep.subr.bf16.mxu1 %v1589_v2  ;;  %v1594_v7 = vld [vmem:[%s2269_s1 + $0x30] sm:$0xff]   ;;  %v1598_v11 = vld [vmem:[%s2269_s1 + $0x28] sm:$0xff]  }
  0x1d   : > { %v1591_v4 = vld [vmem:[%s2269_s1 + $0xb8] sm:$0xff]   ;;  %1374 = vmatpush3.bf16.msra.mxu0 %v1590_v3  ;;  %v1595_v8 = vld [vmem:[%s2269_s1 + $0xb0] sm:$0xff]   ;;  %v1599_v12 = vld [vmem:[%s2269_s1 + $0xa8] sm:$0xff]  }
  0x1e   : > { %1438 = vmatpush3.bf16.msra.mxu1 %v1591_v4  ;;  %1375 = vmatprep.subr.bf16.mxu0 %v1592_v5  ;;  %v1600_v13 = vld [vmem:[%s2269_s1 + $0x60] sm:$0xff]   ;;  %v1604_v17 = vld [vmem:[%s2269_s1 + $0x58] sm:$0xff]   ;;  %v1608_v21 = vld [vmem:[%s2269_s1 + $0x50] sm:$0xff]  }
  0x1f   : > { %1439 = vmatprep.subr.bf16.mxu1 %v1593_v6  ;;  %v1601_v14 = vld [vmem:[%s2269_s1 + $0xe0] sm:$0xff]   ;;  %v1605_v18 = vld [vmem:[%s2269_s1 + $0xd8] sm:$0xff]   ;;  %v1609_v22 = vld [vmem:[%s2269_s1 + $0xd0] sm:$0xff]  }
  0x20   : > { %v1602_v15 = vld [vmem:[%s2269_s1 + $0x20] sm:$0xff]   ;;  %v1606_v19 = vld [vmem:[%s2269_s1 + $0x18] sm:$0xff]   ;;  %v1610_v23 = vld [vmem:[%s2269_s1 + $0x10] sm:$0xff]  }
  0x21   : > { %1376 = vmatpush3.bf16.msra.mxu0 %v1594_v7  ;;  %v1603_v16 = vld [vmem:[%s2269_s1 + $0xa0] sm:$0xff]   ;;  %v1607_v20 = vld [vmem:[%s2269_s1 + $0x98] sm:$0xff]   ;;  %v1611_v24 = vld [vmem:[%s2269_s1 + $0x90] sm:$0xff]  }
  0x22   : > { %1440 = vmatpush3.bf16.msra.mxu1 %v1595_v8  ;;  %1377 = vmatprep.subr.bf16.mxu0 %v1596_v9  ;;  %v1612_v25 = vld [vmem:[%s2269_s1 + $0x48] sm:$0xff]   ;;  %v1616_v29 = vld [vmem:[%s2269_s1 + $0x40] sm:$0xff]   ;;  %v1626_v37 = vld [vmem:[%s2269_s1 + $0x118] sm:$0xff]  }
  0x23   : > { %1441 = vmatprep.subr.bf16.mxu1 %v1597_v10  ;;  %v1613_v26 = vld [vmem:[%s2269_s1 + $0xc8] sm:$0xff]   ;;  %v1617_v30 = vld [vmem:[%s2269_s1 + $0xc0] sm:$0xff]   ;;  %v1639_v43 = vld [vmem:[%s2269_s1 + $0x110] sm:$0xff]  }
  0x24   : > { %v1614_v27 = vld [vmem:[%s2269_s1 + $0x8] sm:$0xff]   ;;  %v1618_v31 = vld [vmem:[%s2269_s1] sm:$0xff]   ;;  %v1635_v44 = vld [vmem:[%s1782_s29 + $0x5c] ss:$20 sps:$4 sm:$0xff]  }
  0x25   : > { %1378 = vmatpush3.bf16.msra.mxu0 %v1598_v11  ;;  %v1615_v28 = vld [vmem:[%s2269_s1 + $0x88] sm:$0xff]   ;;  %v1619_v32 = vld [vmem:[%s2269_s1 + $0x80] sm:$0xff]   ;;  %v1640_v48 = vld [vmem:[%s1782_s29 + $0x7c] ss:$20 sps:$4 sm:$0xff]  }
  0x26   : > { %1442 = vmatpush3.bf16.msra.mxu1 %v1599_v12  ;;  %1379 = vmatprep.subr.bf16.mxu0 %v1600_v13  ;;  %v1620_v33 = vld [vmem:[%s1782_s29] ss:$20 sps:$4 sm:$0xff]   ;;  %v1622_v34 = vld [vmem:[%s1782_s29 + $0x4] ss:$20 sps:$4 sm:$0xff]   ;;  %v1623_v35 = vld [vmem:[%s1782_s29 + $0x8] ss:$20 sps:$4 sm:$0xff]  }
  0x27   : > { %1443 = vmatprep.subr.bf16.mxu1 %v1601_v14  ;;  %v1625_v36 = vld [vmem:[%s1782_s29 + $0xc] ss:$20 sps:$4 sm:$0xff]   ;;  %804 = vmatprep.mubr.bf16.mxu0 %v1622_v34  ;;  %v1629_v39 = vld [vmem:[%s1782_s29 + $0x34] ss:$20 sps:$4 sm:$0xff]   ;;  %v1632_v41 = vld [vmem:[%s1782_s29 + $0x30] ss:$20 sps:$4 sm:$0xff]  }
  0x28   : > { %901 = vmatprep.mubr.bf16.mxu1 %v1625_v36  ;;  %v1627_v38 = vld [vmem:[%s1782_s29 + $0x2c] ss:$20 sps:$4 sm:$0xff]   ;;  %v1631_v40 = vld [vmem:[%s1782_s29 + $0x28] ss:$20 sps:$4 sm:$0xff]   ;;  %v1637_v45 = vld [vmem:[%s1782_s29 + $0x50] ss:$20 sps:$4 sm:$0xff]  }
  0x29   : > { %1380 = vmatpush3.bf16.msra.mxu0 %v1602_v15  ;;  %v1633_v42 = vld [vmem:[%s1782_s29 + $0x54] ss:$20 sps:$4 sm:$0xff]   ;;  %v1638_v46 = vld [vmem:[%s1782_s29 + $0x58] ss:$20 sps:$4 sm:$0xff]   ;;  %v1665_v50 = vld [vmem:[%s2269_s1 + $0x100] sm:$0xff]  }
  0x2a   : > { %1444 = vmatpush3.bf16.msra.mxu1 %v1603_v16  ;;  %1381 = vmatprep.subr.bf16.mxu0 %v1604_v17  ;;  %v1652_v47 = vld [vmem:[%s2269_s1 + $0x108] sm:$0xff]   ;;  %v1642_v49 = vld [vmem:[%s1782_s29 + $0x84] ss:$20 sps:$4 sm:$0xff]   ;;  %v1645_v52 = vld [vmem:[%s1782_s29 + $0x80] ss:$20 sps:$4 sm:$0xff]  }
  0x2b   : > { %1445 = vmatprep.subr.bf16.mxu1 %v1605_v18  ;;  %v1644_v51 = vld [vmem:[%s1782_s29 + $0x78] ss:$20 sps:$4 sm:$0xff]   ;;  %v1650_v55 = vld [vmem:[%s1782_s29 + $0xa0] ss:$20 sps:$4 sm:$0xff]   ;;  %v1651_v56 = vld [vmem:[%s1782_s29 + $0xa8] ss:$20 sps:$4 sm:$0xff]  }
  0x2c   : > { %v1646_v53 = vld [vmem:[%s1782_s29 + $0xa4] ss:$20 sps:$4 sm:$0xff]   ;;  %v1648_v54 = vld [vmem:[%s1782_s29 + $0xac] ss:$20 sps:$4 sm:$0xff]   ;;  %v1655_v58 = vld [vmem:[%s1782_s29 + $0xd4] ss:$20 sps:$4 sm:$0xff]  }
  0x2d   : > { %1382 = vmatpush3.bf16.msra.mxu0 %v1606_v19  ;;  %v1653_v57 = vld [vmem:[%s1782_s29 + $0xcc] ss:$20 sps:$4 sm:$0xff]   ;;  %v1657_v59 = vld [vmem:[%s1782_s29 + $0xc8] ss:$20 sps:$4 sm:$0xff]   ;;  %v1658_v60 = vld [vmem:[%s1782_s29 + $0xd0] ss:$20 sps:$4 sm:$0xff]  }
  0x2e   : > { %1446 = vmatpush3.bf16.msra.mxu1 %v1607_v20  ;;  %1383 = vmatprep.subr.bf16.mxu0 %v1608_v21  ;;  %v1659_v61 = vld [vmem:[%s1782_s29 + $0xf4] ss:$20 sps:$4 sm:$0xff]   ;;  %v1661_v62 = vld [vmem:[%s1782_s29 + $0xfc] ss:$20 sps:$4 sm:$0xff]   ;;  %v1664_v0 = vld [vmem:[%s1782_s29 + $0xf8] ss:$20 sps:$4 sm:$0xff]  }
  0x2f   : > { %1447 = vmatprep.subr.bf16.mxu1 %v1609_v22  ;;  %v1663_v63 = vld [vmem:[%s1782_s29 + $0xf0] ss:$20 sps:$4 sm:$0xff]   ;;  %v1670_v3 = vld [vmem:[%s1782_s29 + $0x118] ss:$20 sps:$4 sm:$0xff]   ;;  %v1671_v4 = vld [vmem:[%s1782_s29 + $0x120] ss:$20 sps:$4 sm:$0xff]  }
  0x30   : > { %v1666_v1 = vld [vmem:[%s1782_s29 + $0x11c] ss:$20 sps:$4 sm:$0xff]   ;;  %v1668_v2 = vld [vmem:[%s1782_s29 + $0x124] ss:$20 sps:$4 sm:$0xff]   ;;  %v1676_v9 = vld [vmem:[%s1782_s29 + $0x60] ss:$20 sps:$4 sm:$0xff]  }
  0x31   : > { %1384 = vmatpush3.bf16.msra.mxu0 %v1610_v23  ;;  %v1672_v5 = vld [vmem:[%s1782_s29 + $0x10] ss:$20 sps:$4 sm:$0xff]   ;;  %v1674_v7 = vld [vmem:[%s1782_s29 + $0x38] ss:$20 sps:$4 sm:$0xff]   ;;  %v1677_v10 = vld [vmem:[%s1782_s29 + $0x100] ss:$20 sps:$4 sm:$0xff]  }
  0x32   : > { %1448 = vmatpush3.bf16.msra.mxu1 %v1611_v24  ;;  %1385 = vmatprep.subr.bf16.mxu0 %v1612_v25  ;;  %v1673_v6 = vld [vmem:[%s1782_s29 + $0xb0] ss:$20 sps:$4 sm:$0xff]   ;;  %v1675_v8 = vld [vmem:[%s1782_s29 + $0xd8] ss:$20 sps:$4 sm:$0xff]   ;;  %v1678_v11 = vld [vmem:[%s1782_s29 + $0x88] ss:$20 sps:$4 sm:$0xff]  }
  0x33   : > { %1449 = vmatprep.subr.bf16.mxu1 %v1613_v26  ;;  %v1679_v12 = vld [vmem:[%s1782_s29 + $0x128] ss:$20 sps:$4 sm:$0xff]   ;;  %s1369_s29 = sshll.u32 %s1702_s12, 7 }
  0x35   : > { %1386 = vmatpush3.bf16.msra.mxu0 %v1614_v27 }
  0x36   : > { %1450 = vmatpush3.bf16.msra.mxu1 %v1615_v28  ;;  %1387 = vmatprep.subr.bf16.mxu0 %v1616_v29 }
  0x37   : > { %1451 = vmatprep.subr.bf16.mxu1 %v1617_v30 }
  0x39   : > { %1388 = vmatpush3.bf16.msra.mxu0 %v1618_v31 }
  0x3a   : > { %1452 = vmatpush3.bf16.msra.mxu1 %v1619_v32  ;;  %1513 = vmatprep.subr.bf16.mxu0 %v1626_v37 }
  0x3b   : > { %1537 = vmatprep.subr.bf16.mxu1 %v1626_v37 }
  0x3c   : > { %805 = vmatmul.mubr.bf16.vlgmr.msra.gmra.mxu0 %v1620_v33 }
  0x3d   : > { %902 = vmatmul.mubr.bf16.vlgmr.msra.gmra.mxu1 %v1623_v35  ;;  %1514 = vmatpush3.bf16.msra.mxu0 %v1626_v37 }
  0x3e   : > { %812 = vmatprep.mubr.bf16.mxu0 %v1627_v38  ;;  %909 = vmatprep.mubr.bf16.mxu1 %v1629_v39 }
  0x3f   : > { %1541 = vmatpush3.bf16.msra.mxu1 %v1626_v37  ;;  %1515 = vmatprep.subr.bf16.mxu0 %v1639_v43 }
  0x40   : > { %1538 = vmatprep.subr.bf16.mxu1 %v1639_v43 }
  0x41   : > { %1516 = vmatpush3.bf16.msra.mxu0 %v1639_v43 }
  0x42   : > { %1517 = vmatprep.subr.bf16.mxu0 %v1652_v47 }
  0x43   : > { %1542 = vmatpush3.bf16.msra.mxu1 %v1639_v43 }
  0x44   : > { %813 = vmatmul.mubr.bf16.gmra.mxu0 %v1631_v40  ;;  %1539 = vmatprep.subr.bf16.mxu1 %v1652_v47 }
  0x45   : > { %910 = vmatmul.mubr.bf16.gmra.mxu1 %v1632_v41  ;;  %820 = vmatprep.mubr.bf16.mxu0 %v1633_v42 }
  0x46   : > { %917 = vmatprep.mubr.bf16.mxu1 %v1635_v44  ;;  %1518 = vmatpush3.bf16.msra.mxu0 %v1652_v47 }
  0x47   : > { %1543 = vmatpush3.bf16.msra.mxu1 %v1652_v47  ;;  %1519 = vmatprep.subr.bf16.mxu0 %v1665_v50 }
  0x48   : > { %1540 = vmatprep.subr.bf16.mxu1 %v1665_v50 }
  0x4a   : > { %1520 = vmatpush3.bf16.msra.mxu0 %v1665_v50 }
  0x4b   : > { %1544 = vmatpush3.bf16.msra.mxu1 %v1665_v50 }
  0x4c   : > { %821 = vmatmul.mubr.bf16.gmra.mxu0 %v1637_v45 }
  0x4d   : > { %918 = vmatmul.mubr.bf16.gmra.mxu1 %v1638_v46  ;;  %828 = vmatprep.mubr.bf16.mxu0 %v1640_v48 }
  0x4e   : > { %925 = vmatprep.mubr.bf16.mxu1 %v1642_v49 }
  0x54   : > { %829 = vmatmul.mubr.bf16.gmra.mxu0 %v1644_v51 }
  0x55   : > { %926 = vmatmul.mubr.bf16.gmra.mxu1 %v1645_v52  ;;  %836 = vmatprep.mubr.bf16.mxu0 %v1646_v53 }
  0x56   : > { %933 = vmatprep.mubr.bf16.mxu1 %v1648_v54 }
  0x5c   : > { %837 = vmatmul.mubr.bf16.gmra.mxu0 %v1650_v55 }
  0x5d   : > { %934 = vmatmul.mubr.bf16.gmra.mxu1 %v1651_v56  ;;  %844 = vmatprep.mubr.bf16.mxu0 %v1653_v57 }
  0x5e   : > { %941 = vmatprep.mubr.bf16.mxu1 %v1655_v58 }
  0x64   : > { %845 = vmatmul.mubr.bf16.gmra.mxu0 %v1657_v59 }
  0x65   : > { %942 = vmatmul.mubr.bf16.gmra.mxu1 %v1658_v60  ;;  %852 = vmatprep.mubr.bf16.mxu0 %v1659_v61  ;;  %v1080_v61 = vlaneseq }
  0x66   : > { %949 = vmatprep.mubr.bf16.mxu1 %v1661_v62 }
  0x6c   : > { %853 = vmatmul.mubr.bf16.gmra.mxu0 %v1663_v63 }
  0x6d   : > { %950 = vmatmul.mubr.bf16.gmra.mxu1 %v1664_v0  ;;  %860 = vmatprep.mubr.bf16.mxu0 %v1666_v1 }
  0x6e   : > { %957 = vmatprep.mubr.bf16.mxu1 %v1668_v2  ;;  %v2038_v2 = vshrl.u32 %v1080_v61, 7 }
  0x70   : > { %v1091_v61 = vadd.s32 80, %v2038_v2 }
  0x74   : > { %861 = vmatmul.mubr.bf16.gmra.mxu0 %v1670_v3 }
  0x75   : > { %958 = vmatmul.mubr.bf16.gmra.mxu1 %v1671_v4  ;;  %1521 = vmatprep.mubr.msk.bf16.mxu0 %vm747_vm0, %v1672_v5 }
  0x76   : > { %1529 = vmatprep.mubr.msk.bf16.mxu1 %vm747_vm0, %v1673_v6 }
  0x7c   : > { %1522 = vmatmul.mubr.msk.bf16.vlgmr.msra.gmra.mxu0 %vm747_vm0, %v1674_v7  ;;  %v1083_v7 = vadd.s32 16, %v2038_v2 }
  0x7d   : > { %1530 = vmatmul.mubr.msk.bf16.vlgmr.msra.gmra.mxu1 %vm747_vm0, %v1675_v8  ;;  %1525 = vmatprep.mubr.msk.bf16.mxu0 %vm747_vm0, %v1676_v9 }
  0x7e   : > { %1533 = vmatprep.mubr.msk.bf16.mxu1 %vm747_vm0, %v1677_v10  ;;  %v2052_v10 = vstv %s1369_s29 }
  0x84   : > { %1526 = vmatmul.mubr.msk.bf16.gmra.mxu0 %vm747_vm0, %v1678_v11  ;;  %v2057_v11 = vld [vmem:[%s2270_s2] ss:$0 sm:$0xff] }
  0x85   : > { %1534 = vmatmul.mubr.msk.bf16.gmra.mxu1 %vm747_vm0, %v1679_v12 }
  0xfc   : > { %v1389_v13 = vpop.f32.mrf.mxu0 }
  0xfd   : > { %v1942_v14 = vpop.f32.mrf.mxu1 }
  0xfe   : > { %v1390_v15 = vpop.f32.mrf.mxu0 }
  0xff   : > { %v1944_v16 = vpop.f32.mrf.mxu1  ;;  %v1391_v8 = vadd.f32 %v1390_v15, %v1389_v13  ;;  %v1082_v13 = vadd.s32 8, %v2038_v2 }
 0x100   : > { %v1946_v17 = vpop.f32.mrf.mxu0 }
 0x101   : > { %v1948_v18 = vpop.f32.mrf.mxu1 }
 0x102   : > { %v1950_v19 = vpop.f32.mrf.mxu0 }
 0x103   : > { %v1952_v20 = vpop.f32.mrf.mxu1 }
 0x104   : > { %v1395_v21 = vpop.f32.mrf.mxu0 }
 0x105   : > { %v1954_v22 = vpop.f32.mrf.mxu1 }
 0x106   : > { %v1396_v23 = vpop.f32.mrf.mxu0 }
 0x107   : > { %v1956_v24 = vpop.f32.mrf.mxu1  ;;  %v1397_v15 = vadd.f32 %v1396_v23, %v1395_v21  ;;  %v1090_v21 = vadd.s32 72, %v2038_v2  ;;  %v1394_v23 = vadd.f32 %v1950_v19, %v1946_v17  ;;  %v1087_v17 = vadd.s32 48, %v2038_v2 }
 0x108   : > { %v1958_v25 = vpop.f32.mrf.mxu0  ;;  %v1085_v19 = vadd.s32 32, %v2038_v2 }
 0x109   : > { %v1960_v26 = vpop.f32.mrf.mxu1 }
 0x10a   : > { %v1962_v27 = vpop.f32.mrf.mxu0 }
 0x10b   : > { %v1964_v28 = vpop.f32.mrf.mxu1 }
 0x10c   : > { %v1966_v29 = vpop.f32.mrf.mxu0 }
 0x10d   : > { %v1968_v30 = vpop.f32.mrf.mxu1 }
 0x10e   : > { %v1970_v31 = vpop.f32.mrf.mxu0 }
 0x10f   : > { %v1972_v32 = vpop.f32.mrf.mxu1 }
 0x110   : > { %v1974_v33 = vpop.f32.mrf.mxu0 }
 0x111   : > { %v1976_v34 = vpop.f32.mrf.mxu1 }
 0x112   : > { %v1978_v35 = vpop.f32.mrf.mxu0 }
 0x113   : > { %v1980_v36 = vpop.f32.mrf.mxu1 }
 0x114   : > { %v1982_v37 = vpop.f32.mrf.mxu0 }
 0x115   : > { %v1984_v38 = vpop.f32.mrf.mxu1 }
 0x116   : > { %v1986_v39 = vpop.f32.mrf.mxu0 }
 0x117   : > { %v1988_v40 = vpop.f32.mrf.mxu1 }
 0x118   : > { %v1990_v41 = vpop.f32.mrf.mxu0 }
 0x119   : > { %v1992_v42 = vpop.f32.mrf.mxu1 }
 0x11a   : > { %v1994_v43 = vpop.f32.mrf.mxu0 }
 0x11b   : > { %v1996_v44 = vpop.f32.mrf.mxu1 }
 0x11c   : > { %v1998_v45 = vpop.f32.mrf.mxu0 }
 0x11d   : > { %v2000_v46 = vpop.f32.mrf.mxu1 }
 0x11e   : > { %v2002_v47 = vpop.f32.mrf.mxu0 }
 0x11f   : > { %v2004_v48 = vpop.f32.mrf.mxu1 }
 0x120   : > { %v2006_v49 = vpop.f32.mrf.mxu0 }
 0x121   : > { %v2008_v50 = vpop.f32.mrf.mxu1 }
 0x122   : > { %v2010_v51 = vpop.f32.mrf.mxu0 }
 0x123   : > { %v2012_v52 = vpop.f32.mrf.mxu1 }
 0x124   : > { %v2014_v53 = vpop.f32.mrf.mxu0 }
 0x125   : > { %v2016_v54 = vpop.f32.mrf.mxu1 }
 0x126   : > { %v2018_v55 = vpop.f32.mrf.mxu0 }
 0x127   : > { %v2020_v56 = vpop.f32.mrf.mxu1 }
 0x128   : > { %v2022_v57 = vpop.f32.mrf.mxu0 }
 0x129   : > { %v2024_v58 = vpop.f32.mrf.mxu1 }
 0x12a   : > { %2272 = vst [vmem:[#allocation2_spill] sm:$0xff] %v2024_v58  ;;  %v2026_v59 = vpop.f32.mrf.mxu0  ;;  %v2101_v58 = vadd.s32 %v2052_v10, %v1082_v13 }
 0x12b   : > { %v2028_v60 = vpop.f32.mrf.mxu1 }
 0x12c   : > { %2273 = vst [vmem:[#allocation3_spill] sm:$0xff] %v2028_v60  ;;  %v2030_v62 = vpop.f32.mrf.mxu0  ;;  %vm1115_vm3 = vcmp.lt.s32.totalorder %v2101_v58, 256 }
 0x12d   : > { %v2032_v63 = vpop.f32.mrf.mxu1 }
 0x12e   : > { %2274 = vst [vmem:[#allocation4_spill] sm:$0xff] %v2032_v63  ;;  %v2034_v0 = vpop.f32.mrf.mxu0  ;;  %v2070_v63 = vadd.s32 %v2052_v10, %v1083_v7  ;;  %v1400_v7 = vadd.f32 %v1962_v27, %v1958_v25  ;;  %v815_v25 = vadd.f32 %v1397_v15, %v2057_v11  ;;  %v1461_v27 = vadd.f32 %v1956_v24, %v1954_v22 }
 0x12f   : > { %v2036_v1 = vpop.f32.mrf.mxu1  ;;  %v1088_v15 = vadd.s32 56, %v2038_v2  ;;  %v810_v22 = vadd.f32 %v1394_v23, %v2057_v11  ;;  %v1458_v24 = vadd.f32 %v1952_v20, %v1948_v18  ;;  %v2137_v18 = vadd.s32 %v2052_v10, %v1085_v19 }
 0x130   : > { %2275 = vst [vmem:[#allocation5_spill] sm:$0xff] %v2036_v1  ;;  %v2040_v3 = vpop.f32.mrf.mxu0  ;;  %vm1116_vm2 = vcmp.lt.s32.totalorder %v2070_v63, 256 }
 0x131   : > { %2276 = vst [vmem:[#allocation6_spill] sm:$0xff] %v2040_v3  ;;  %v2042_v4 = vpop.f32.mrf.mxu1  ;;  %v1455_v3 = vadd.f32 %v1944_v16, %v1942_v14  ;;  %v2150_v19 = vadd.s32 %v2052_v10, %v1088_v15  ;;  %vm1118_vm5 = vcmp.lt.s32.totalorder %v2137_v18, 256 }
 0x132   : > { %2277 = vst [vmem:[#allocation7_spill] sm:$0xff] %v2042_v4  ;;  %v2045_v5 = vpop.f32.mrf.mxu0  ;;  %v1089_v4 = vadd.s32 64, %v2038_v2 }
 0x133   : > { %2278 = vst [vmem:[#allocation8_spill] sm:$0xff] %v2045_v5  ;;  %v2047_v6 = vpop.f32.mrf.mxu1  ;;  %v1092_v5 = vadd.s32 88, %v2038_v2  ;;  %vm1121_vm8 = vcmp.lt.s32.totalorder %v2150_v19, 256  ;;  %v1095_v19 = vadd.s32 112, %v2038_v2 }
 0x134   : > { %2279 = vst [vmem:[#allocation9_spill] sm:$0xff] %v2047_v6  ;;  %v2050_v9 = vpop.f32.mrf.mxu0  ;;  %v1084_v6 = vadd.s32 24, %v2038_v2  ;;  %v2093_v14 = vadd.s32 %v2052_v10, %v1089_v4  ;;  %v1403_v4 = vadd.f32 %v1970_v31, %v1966_v29  ;;  %v818_v29 = vadd.f32 %v1400_v7, %v2057_v11 }
 0x135   : > { %2280 = vst [vmem:[#allocation10_spill] sm:$0xff] %v2050_v9  ;;  %v2059_v12 = vpop.f32.mrf.mxu1  ;;  %v1464_v31 = vadd.f32 %v1964_v28, %v1960_v26  ;;  %v1467_v26 = vadd.f32 %v1972_v32, %v1968_v30  ;;  %v912_v28 = vadd.f32 %v1461_v27, %v815_v25  ;;  %v1415_v30 = vadd.f32 %v2002_v47, %v1998_v45 }
 0x136   : > { %2281 = vst [vmem:[#allocation11_spill] sm:$0xff] %v2059_v12  ;;  %v2063_v1 = vpop.f32.mrf.mxu0  ;;  %v807_v12 = vadd.f32 %v1391_v8, %v2057_v11  ;;  %v2090_v8 = vadd.s32 %v2052_v10, %v1091_v61  ;;  %v823_v20 = vadd.f32 %v1403_v4, %v2057_v11  ;;  %vm1122_vm9 = vcmp.lt.s32.totalorder %v2093_v14, 256 }
 0x137   : > { %2282 = vst [vmem:[#allocation12_spill] sm:$0xff] %v2063_v1  ;;  %v2067_v9 = vpop.f32.mrf.mxu1  ;;  %v2080_v1 = vadd.s32 %v2052_v10, %v2038_v2  ;;  %v915_v25 = vadd.f32 %v1464_v31, %v818_v29 }
 0x138   : > { %2283 = vst [vmem:[#allocation13_spill] sm:$0xff] %v2067_v9  ;;  %v2076_v60 = vpop.f32.mrf.mxu0  ;;  %2286 = vst [vmem:[#allocation16_spill] sm:$0xff] %v2090_v8  ;;  %v904_v13 = vadd.f32 %v1455_v3, %v807_v12  ;;  %v920_v45 = vadd.f32 %v1467_v26, %v823_v20 }
 0x139   : > { %2284 = vst [vmem:[#allocation14_spill] sm:$0xff] %v2076_v60  ;;  %v2087_v9 = vpop.f32.mrf.mxu1  ;;  %v2098_v60 = vadd.s32 %v2052_v10, %v1084_v6  ;;  %v2113_v6 = vadd.s32 %v2052_v10, %v1092_v5  ;;  %vm1114_vm1 = vcmp.lt.s32.totalorder %v2080_v1, 256  ;;  %v1409_v5 = vadd.f32 %v1986_v39, %v1982_v37  ;;  %v2296_v18 = vld [vmem:[#allocation7_spill] sm:$0xff] }
 0x13a   : > { %2285 = vst [vmem:[#allocation15_spill] sm:$0xff] %v2087_v9  ;;  %v2095_v16 = vpop.f32.mrf.mxu0  ;;  %v2117_v9 = vadd.s32 %v2052_v10, %v1090_v21  ;;  %v2134_v21 = vadd.s32 %v2052_v10, %v1087_v17  ;;  %v1406_v37 = vadd.f32 %v1978_v35, %v1974_v33  ;;  %v1412_v39 = vadd.f32 %v1994_v43, %v1990_v41 }
 0x13b   : > { %2287 = vst [vmem:[#allocation17_spill] sm:$0xff] %v2095_v16  ;;  %v2110_v61 = vpop.f32.mrf.mxu1  ;;  %v1086_v16 = vadd.s32 40, %v2038_v2  ;;  %vm1117_vm4 = vcmp.lt.s32.totalorder %v2098_v60, 256  ;;  %v907_v33 = vadd.f32 %v1458_v24, %v810_v22  ;;  %v831_v35 = vadd.f32 %v1409_v5, %v2057_v11 }
 0x13c   : > { %v1523_v8 = vpop.f32.mrf.mxu0  ;;  %v1473_v41 = vadd.f32 %v1988_v40, %v1984_v38  ;;  %v1418_v43 = vadd.f32 %v2010_v51, %v2006_v49  ;;  %v826_v47 = vadd.f32 %v1406_v37, %v2057_v11  ;;  %v834_v22 = vadd.f32 %v1412_v39, %v2057_v11 }
 0x13d   : > { %v2127_v3 = vpop.f32.mrf.mxu1  ;;  %v2153_v4 = vadd.s32 %v2052_v10, %v1086_v16  ;;  %v1009_v32 = vadd.f32 %v1523_v8, %v912_v28  ;;  %v1470_v8 = vadd.f32 %v1980_v36, %v1976_v34  ;;  %v1476_v38 = vadd.f32 %v1996_v44, %v1992_v42 }
 0x13e   : > { %v1000_v12 = vpop.f32.mrf.mxu0  ;;  %v839_v49 = vadd.f32 %v1415_v30, %v2057_v11  ;;  %v1479_v51 = vadd.f32 %v2004_v48, %v2000_v46  ;;  %v842_v5 = vadd.f32 %v1418_v43, %v2057_v11  ;;  %v1482_v34 = vadd.f32 %v2012_v52, %v2008_v50  ;;  %v2288_v43 = vld [vmem:[#allocation2_spill] sm:$0xff] }
 0x13f   : > { %v1001_v23 = vadd.f32 %v1000_v12, %v904_v13  ;;  %v2142_v7 = vpop.f32.mrf.mxu1  ;;  %vm1119_vm6 = vcmp.lt.s32.totalorder %v2153_v4, 256  ;;  %v1065_v29 = vmax.f32 %v1009_v32, 0.0  ;;  %v1421_v36 = vadd.f32 %v2018_v55, %v2014_v53  ;;  %v2301_v4 = vld [vmem:[#allocation13_spill] sm:$0xff] }
 0x140   : > { %v1524_v17 = vpop.f32.mrf.mxu0  ;;  %v928_v42 = vadd.f32 %v1473_v41, %v831_v35  ;;  %vm1120_vm7 = vcmp.lt.s32.totalorder %v2134_v21, 256  ;;  %v1424_v28 = vadd.f32 %v2026_v59, %v2022_v57  ;;  %v931_v52 = vadd.f32 %v1476_v38, %v834_v22  ;;  %v2292_v22 = vld [vmem:[#allocation4_spill] sm:$0xff]  ;;  %v2293_v38 = vld [vmem:[#allocation5_spill] sm:$0xff] }
 0x141   : > { %v2157_v27 = vpop.f32.mrf.mxu1  ;;  %v1063_v16 = vmax.f32 %v1001_v23, 0.0  ;;  %v1012_v15 = vadd.f32 %v1524_v17, %v915_v25  ;;  %v923_v55 = vadd.f32 %v1470_v8, %v826_v47  ;;  %v1164_v1 = vsel %vm1116_vm2, %v1065_v29, 0.0  ;;  %v2294_v29 = vld [vmem:[#allocation10_spill] sm:$0xff] }
 0x142   : > { %v1003_v13 = vpop.f32.mrf.mxu0  ;;  %v936_v37 = vadd.f32 %v1479_v51, %v839_v49  ;;  %v847_v58 = vadd.f32 %v1421_v36, %v2057_v11  ;;  %v1485_v30 = vadd.f32 %v2020_v56, %v2016_v54  ;;  %v1427_v57 = vadd.f32 %v2034_v0, %v2030_v62  ;;  %v2291_v54 = vld [vmem:[#allocation8_spill] sm:$0xff] }
 0x143   : > { %v1004_v12 = vadd.f32 %v1003_v13, %v907_v33  ;;  %v1035_v40 = vpop.f32.mrf.mxu1  ;;  %v1162_v20 = vsel %vm1114_vm1, %v1063_v16, 0.0  ;;  %v1066_v26 = vmax.f32 %v1012_v15, 0.0  ;;  %v939_v63 = vadd.f32 %v1482_v34, %v842_v5  ;;  %v2289_v13 = vld [vmem:[#allocation3_spill] sm:$0xff]  ;;  %v2290_v15 = vld [vmem:[#allocation6_spill] sm:$0xff] }
 0x144   : > { %v1527_v24 = vpop.f32.mrf.mxu0  ;;  %v850_v41 = vadd.f32 %v1424_v28, %v2057_v11  ;;  %v1488_v16 = vadd.f32 %v2289_v13, %v2288_v43  ;;  %v1430_v56 = vadd.f32 %v2291_v54, %v2290_v15  ;;  %vm1123_vm10 = vcmp.lt.s32.totalorder %v2117_v9, 256  ;;  %v2298_v28 = vld [vmem:[#allocation14_spill] sm:$0xff] }
 0x145   : > { %v1064_v31 = vmax.f32 %v1004_v12, 0.0  ;;  %v2187_v50 = vpop.f32.mrf.mxu1  ;;  %v1025_v39 = vadd.f32 %v1527_v24, %v928_v42  ;;  %v1165_v25 = vsel %vm1117_vm4, %v1066_v26, 0.0  ;;  %v1033_v12 = vadd.f32 %v2142_v7, %v936_v37 }
 0x146   : > { %v1016_v44 = vpop.f32.mrf.mxu0  ;;  %v855_v8 = vadd.f32 %v1427_v57, %v2057_v11  ;;  %v1491_v24 = vadd.f32 %v2293_v38, %v2292_v22  ;;  %v944_v49 = vadd.f32 %v1485_v30, %v847_v58  ;;  %v1036_v34 = vadd.f32 %v1035_v40, %v939_v63 }
 0x147   : > { %v1163_v46 = vsel %vm1115_vm3, %v1064_v31, 0.0  ;;  %v1017_v48 = vadd.f32 %v1016_v44, %v920_v45  ;;  %v1048_v0 = vpop.f32.mrf.mxu1  ;;  %v1069_v45 = vmax.f32 %v1025_v39, 0.0  ;;  %v2295_v31 = vld [vmem:[#allocation12_spill] sm:$0xff]  ;;  %v858_v42 = vadd.f32 %v1430_v56, %v2057_v11  ;;  %v2297_v44 = vld [vmem:[#allocation9_spill] sm:$0xff] }
 0x148   : > { %v1179_v23 = vadd.f32 %v1163_v46, %v1162_v20  ;;  %v1528_v53 = vpop.f32.mrf.mxu0  ;;  %v1433_v5 = vadd.f32 %v2295_v31, %v2294_v29  ;;  %v1494_v20 = vadd.f32 %v2297_v44, %v2296_v18  ;;  %v947_v26 = vadd.f32 %v1488_v16, %v850_v41 }
 0x149   : > { %v1067_v17 = vmax.f32 %v1017_v48, 0.0  ;;  %v1028_v33 = vadd.f32 %v1528_v53, %v931_v52  ;;  %v1536_v46 = vpop.f32.mrf.mxu1  ;;  %v1041_v53 = vadd.f32 %v2127_v3, %v944_v49  ;;  %v1168_v40 = vsel %vm1120_vm7, %v1069_v45, 0.0  ;;  %v2302_v3 = vld [vmem:[#allocation15_spill] sm:$0xff] }
 0x14a   : > { %v1180_v59 = vadd.f32 %v1179_v23, %v1164_v1  ;;  %v1019_v32 = vpop.f32.mrf.mxu0  ;;  %v2299_v23 = vld [vmem:[#allocation17_spill] sm:$0xff]  ;;  %v2300_v1 = vld [vmem:[#allocation11_spill] sm:$0xff]  ;;  %v952_v39 = vadd.f32 %v1491_v24, %v855_v8  ;;  %v863_v30 = vadd.f32 %v1433_v5, %v2057_v11  ;;  %v1044_v57 = vadd.f32 %v2157_v27, %v947_v26  ;;  %v2303_v27 = vld [vmem:[#allocation16_spill] sm:$0xff] }
 0x14b   : > { %v1020_v35 = vadd.f32 %v1019_v32, %v923_v55  ;;  %v1166_v60 = vsel %vm1118_vm5, %v1067_v17, 0.0  ;;  %v1070_v36 = vmax.f32 %v1028_v33, 0.0  ;;  %v1436_v52 = vadd.f32 %v2299_v23, %v2298_v28  ;;  %v1051_v33 = vpop.f32.mrf.mxu1 }
 0x14c   : > { %v1181_v62 = vadd.f32 %v1180_v59, %v1165_v25  ;;  %v1071_v55 = vmax.f32 %v1033_v12, 0.0  ;;  %v1497_v37 = vadd.f32 %v2301_v4, %v2300_v1  ;;  %v1093_v17 = vadd.s32 96, %v2038_v2 }
 0x14d   : > { %v1068_v47 = vmax.f32 %v1020_v35, 0.0  ;;  %v1072_v59 = vmax.f32 %v1036_v34, 0.0  ;;  %v1169_v32 = vsel %vm1121_vm8, %v1070_v36, 0.0  ;;  %v1500_v25 = vadd.f32 %v2110_v61, %v2302_v3 }
 0x14e   : > { %v1182_v51 = vadd.f32 %v1181_v62, %v1166_v60  ;;  %v955_v63 = vadd.f32 %v1494_v20, %v858_v42  ;;  %v1094_v35 = vadd.s32 104, %v2038_v2  ;;  %v866_v41 = vadd.f32 %v1436_v52, %v2057_v11 }
 0x14f   : > { %v1167_v7 = vsel %vm1119_vm6, %v1068_v47, 0.0  ;;  %v1073_v43 = vmax.f32 %v1041_v53, 0.0  ;;  %v1170_v13 = vsel %vm1122_vm9, %v1071_v55, 0.0  ;;  %v1049_v16 = vadd.f32 %v1048_v0, %v952_v39 }
 0x150   : > { %v1183_v48 = vadd.f32 %v1182_v51, %v1167_v7  ;;  %vm1124_vm11 = vcmp.lt.s32.totalorder %v2303_v27, 256  ;;  %v1110_v15 = vadd.s32 %v2052_v10, %v1093_v17  ;;  %v1074_v61 = vmax.f32 %v1044_v57, 0.0 }
 0x151   : > { %v1171_v56 = vsel %vm1123_vm10, %v1072_v59, 0.0  ;;  %v960_v62 = vadd.f32 %v1497_v37, %v863_v30  ;;  %v1052_v12 = vadd.f32 %v1051_v33, %v955_v63  ;;  %vm1125_vm12 = vcmp.lt.s32.totalorder %v2113_v6, 256 }
 0x152   : > { %v1184_v58 = vadd.f32 %v1183_v48, %v1168_v40  ;;  %v1096_v11 = vadd.s32 120, %v2038_v2  ;;  %v1111_v14 = vadd.s32 %v2052_v10, %v1094_v35  ;;  %v1172_v45 = vsel %vm1124_vm11, %v1073_v43, 0.0  ;;  %v1178_v48 = vld [vmem:[%s1777_s23] sm:$0x1] }
 0x153   : > { %v1057_v60 = vadd.f32 %v2187_v50, %v960_v62  ;;  %v1075_v47 = vmax.f32 %v1049_v16, 0.0  ;;  %v963_v8 = vadd.f32 %v1500_v25, %v866_v41  ;;  %v1112_v22 = vadd.s32 %v2052_v10, %v1095_v19 }
 0x154   : > { %v1185_v21 = vadd.f32 %v1184_v58, %v1169_v32  ;;  %vm1126_vm13 = vcmp.lt.s32.totalorder %v1110_v15, 256  ;;  %v1173_v9 = vsel %vm1125_vm12, %v1074_v61, 0.0  ;;  %v1076_v49 = vmax.f32 %v1052_v12, 0.0 }
 0x155   : > { %v1060_v24 = vadd.f32 %v1536_v46, %v963_v8  ;;  %v1113_v51 = vadd.s32 %v2052_v10, %v1096_v11  ;;  %vm1127_vm14 = vcmp.lt.s32.totalorder %v1111_v14, 256  ;;  %v1077_v2 = vmax.f32 %v1057_v60, 0.0 }
 0x156   : > { %v1186_v54 = vadd.f32 %v1185_v21, %v1170_v13  ;;  %v1174_v29 = vsel %vm1126_vm13, %v1075_v47, 0.0  ;;  %vm1128_vm15 = vcmp.lt.s32.totalorder %v1112_v22, 256  ;;  %v1175_v50 = vsel %vm1127_vm14, %v1076_v49, 0.0 }
 0x157   : > { %v1078_v5 = vmax.f32 %v1060_v24, 0.0  ;;  %vm1129_vm0 = vcmp.lt.s32.totalorder %v1113_v51, 256  ;;  %v1176_v36 = vsel %vm1128_vm15, %v1077_v2, 0.0 }
 0x158   : > { %v1187_v0 = vadd.f32 %v1186_v54, %v1171_v56 }
 0x159   : > { %v1177_v42 = vsel %vm1129_vm0, %v1078_v5, 0.0 }
 0x15a   : > { %v1188_v38 = vadd.f32 %v1187_v0, %v1172_v45 }
 0x15c   : > { %v1189_v6 = vadd.f32 %v1188_v38, %v1173_v9 }
 0x15e   : > { %v1190_v31 = vadd.f32 %v1189_v6, %v1174_v29 }
 0x160   : > { %v1191_v34 = vadd.f32 %v1190_v31, %v1175_v50 }
 0x162   : > { %v1192_v7 = vadd.f32 %v1191_v34, %v1176_v36 }
 0x164   : > { %v1193_v18 = vadd.f32 %v1192_v7, %v1177_v42 }
 0x166   : > { %v1194_v44 = vrot.slane %v1193_v18, 4 }
 0x168   : > { %v1195_v20 = vadd.f32 %v1194_v44, %v1193_v18 }
 0x16a   : > { %v1196_v26 = vrot.slane %v1195_v20, 2 }
 0x16c   : > { %v1197_v10 = vadd.f32 %v1196_v26, %v1195_v20 }
 0x16e   : > { %v1198_v46 = vrot.slane %v1197_v10, 1 }
 0x170   : > { %v1199_v28 = vadd.f32 %v1198_v46, %v1197_v10  ;;  %1205 = sbr.rel (%p1370_p8) target bundleno = 383 (0x17f), region = 40 }
 0x172   : > { %v1200_v23 = vadd.f32 %v1199_v28, %v1178_v48 }
 0x174   : > { %1201 = vst [vmem:[%s1777_s23] sm:$0x1] %v1200_v23 }
 0x17b   : > { %v1206_v52 = vld [vmem:[%s1777_s23] sm:$0x1] }
 0x17c   : > { %v1207_v53 = vmul.f32 0.00390625, %v1206_v52 }
 0x17e   : > { %1208 = vst [vmem:[%s1777_s23] sm:$0x1] %v1207_v53 }
 0x17f PF: > { %s13_s16 = sadd.s32 1, %s1718_s16   ;;  %s2304_s12 = smov %s1710_s14 }
 0x180   : > { %p10_p9 = scmp.ge.s32.totalorder %s13_s16, 6   ;;  %s2305_s13 = smov %s1714_s15 }
 0x181   : > { %s2306_s14 = smov %s2309_s17  ;;  %s2307_s15 = smov %s2313_s18 }
 0x182   :  { %12 = sbr.rel (!%p10_p9) target bundleno = 3 (0x3), region = 70 }

// kernel: a_call__.5
= control target key start
LH: loop header
LB: loop body
LE: loop exit
PB: predicated region body
PF: predicated region fallthrough
CT: control target
= control target key end

     0   :  { %v861_v1 = vmov 0   ;;  %s1096_s1 = inlined_call_operand.vmem [shape: bf16[128,512], index: 1, kind: input, shape index: {}]   ;;  %s1097_s3 = inlined_call_operand.vmem [shape: bf16[512,128], index: 3, kind: input, shape index: {}]   ;;  %s1098_s0 = inlined_call_operand.vmem [shape: f32[2,128], index: 0, kind: input, shape index: {}]   ;;  %s1099_s2 = inlined_call_operand.vmem [shape: f32[1,512], index: 2, kind: input, shape index: {}]   ;;  %s1100_s4 = inlined_call_operand.vmem [shape: f32[1,128], index: 4, kind: input, shape index: {}]   ;;  %s1101_s5 = inlined_call_operand.vmem [shape: f32[2,128], index: 5, kind: output, shape index: {}]  }
   0x1   :  { %v781_v0 = vld [vmem:[%s1096_s1 + $0xe4] ss:$16 sps:$4 sm:$0xff]   ;;  %269 = vmatprep.mubr.bf16.mxu0 %v861_v1  ;;  %310 = vmatprep.mubr.bf16.mxu1 %v861_v1  ;;  %v783_v2 = vld [vmem:[%s1096_s1 + $0xec] ss:$16 sps:$4 sm:$0xff]   ;;  %v785_v3 = vld [vmem:[%s1096_s1 + $0xe0] ss:$16 sps:$4 sm:$0xff]  }
   0x2   :  { %237 = vmatprep.subr.bf16.mxu0 %v781_v0  ;;  %v786_v4 = vld [vmem:[%s1096_s1 + $0xe8] ss:$16 sps:$4 sm:$0xff]   ;;  %278 = vmatprep.subr.bf16.mxu1 %v783_v2  ;;  %v787_v5 = vld [vmem:[%s1096_s1 + $0xc4] ss:$16 sps:$4 sm:$0xff]   ;;  %v789_v6 = vld [vmem:[%s1096_s1 + $0xcc] ss:$16 sps:$4 sm:$0xff]  }
   0x3   :  { %238 = vmatpush1.bf16.msra.mxu0 %v785_v3  ;;  %279 = vmatpush1.bf16.msra.mxu1 %v786_v4  ;;  %v791_v7 = vld [vmem:[%s1096_s1 + $0xc0] ss:$16 sps:$4 sm:$0xff]   ;;  %v792_v8 = vld [vmem:[%s1096_s1 + $0xc8] ss:$16 sps:$4 sm:$0xff]   ;;  %v793_v9 = vld [vmem:[%s1096_s1 + $0xa4] ss:$16 sps:$4 sm:$0xff]   ;;  %v57_v3 = vlaneseq }
   0x4   :  { %239 = vmatprep.subr.bf16.mxu0 %v787_v5  ;;  %280 = vmatprep.subr.bf16.mxu1 %v789_v6  ;;  %v795_v10 = vld [vmem:[%s1096_s1 + $0xac] ss:$16 sps:$4 sm:$0xff]   ;;  %v797_v11 = vld [vmem:[%s1096_s1 + $0xa0] ss:$16 sps:$4 sm:$0xff]   ;;  %v798_v12 = vld [vmem:[%s1096_s1 + $0xa8] ss:$16 sps:$4 sm:$0xff]  }
   0x5   :  { %v799_v13 = vld [vmem:[%s1096_s1 + $0x84] ss:$16 sps:$4 sm:$0xff]   ;;  %v801_v14 = vld [vmem:[%s1096_s1 + $0x8c] ss:$16 sps:$4 sm:$0xff]   ;;  %v803_v15 = vld [vmem:[%s1096_s1 + $0x80] ss:$16 sps:$4 sm:$0xff]  }
   0x6   :  { %v804_v16 = vld [vmem:[%s1096_s1 + $0x88] ss:$16 sps:$4 sm:$0xff]   ;;  %v805_v17 = vld [vmem:[%s1096_s1 + $0x64] ss:$16 sps:$4 sm:$0xff]   ;;  %v807_v18 = vld [vmem:[%s1096_s1 + $0x6c] ss:$16 sps:$4 sm:$0xff]  }
   0x7   :  { %240 = vmatpush1.bf16.msra.mxu0 %v791_v7  ;;  %281 = vmatpush1.bf16.msra.mxu1 %v792_v8  ;;  %v809_v19 = vld [vmem:[%s1096_s1 + $0x60] ss:$16 sps:$4 sm:$0xff]   ;;  %v810_v20 = vld [vmem:[%s1096_s1 + $0x68] ss:$16 sps:$4 sm:$0xff]   ;;  %v811_v21 = vld [vmem:[%s1096_s1 + $0x44] ss:$16 sps:$4 sm:$0xff]  }
   0x8   :  { %241 = vmatprep.subr.bf16.mxu0 %v793_v9  ;;  %282 = vmatprep.subr.bf16.mxu1 %v795_v10  ;;  %v813_v22 = vld [vmem:[%s1096_s1 + $0x4c] ss:$16 sps:$4 sm:$0xff]   ;;  %v815_v23 = vld [vmem:[%s1096_s1 + $0x40] ss:$16 sps:$4 sm:$0xff]   ;;  %v816_v24 = vld [vmem:[%s1096_s1 + $0x48] ss:$16 sps:$4 sm:$0xff]  }
   0x9   :  { %v817_v25 = vld [vmem:[%s1096_s1 + $0x24] ss:$16 sps:$4 sm:$0xff]   ;;  %v819_v26 = vld [vmem:[%s1096_s1 + $0x2c] ss:$16 sps:$4 sm:$0xff]   ;;  %v821_v27 = vld [vmem:[%s1096_s1 + $0x20] ss:$16 sps:$4 sm:$0xff]  }
   0xa   :  { %v822_v28 = vld [vmem:[%s1096_s1 + $0x28] ss:$16 sps:$4 sm:$0xff]   ;;  %v823_v29 = vld [vmem:[%s1096_s1 + $0x4] ss:$16 sps:$4 sm:$0xff]   ;;  %v825_v30 = vld [vmem:[%s1096_s1 + $0xc] ss:$16 sps:$4 sm:$0xff]  }
   0xb   :  { %242 = vmatpush1.bf16.msra.mxu0 %v797_v11  ;;  %283 = vmatpush1.bf16.msra.mxu1 %v798_v12  ;;  %v827_v31 = vld [vmem:[%s1096_s1] ss:$16 sps:$4 sm:$0xff]   ;;  %v828_v32 = vld [vmem:[%s1096_s1 + $0x8] ss:$16 sps:$4 sm:$0xff]   ;;  %v58_v4 = vshrl.u32 %v57_v3, 7 }
   0xc   :  { %243 = vmatprep.subr.bf16.mxu0 %v799_v13  ;;  %284 = vmatprep.subr.bf16.mxu1 %v801_v14  ;;  %v21_v33 = vld [vmem:[%s1098_s0] sm:$0x3]  ;;  %v829_v34 = vld [vmem:[%s1097_s3 + $0x78] sm:$0xff]   ;;  %v833_v39 = vld [vmem:[%s1097_s3 + $0x70] sm:$0xff]  }
   0xd   :  { %v830_v35 = vld [vmem:[%s1097_s3 + $0xf8] sm:$0xff]   ;;  %v22_v37 = vpack.c.bf16 %v21_v33, %v21_v33  ;;  %v834_v40 = vld [vmem:[%s1097_s3 + $0xf0] sm:$0xff]   ;;  %v837_v43 = vld [vmem:[%s1097_s3 + $0x68] sm:$0xff]   ;;  %v67_v5 = vsub.s32 2, %v58_v4  ;;  %v59_v6 = vsub.s32 0, %v58_v4  ;;  %v63_v8 = vsub.s32 1, %v58_v4 }
   0xe   :  { %v831_v36 = vld [vmem:[%s1097_s3 + $0x38] sm:$0xff]   ;;  %v835_v41 = vld [vmem:[%s1097_s3 + $0x30] sm:$0xff]   ;;  %v838_v44 = vld [vmem:[%s1097_s3 + $0xe8] sm:$0xff]   ;;  %v71_v9 = vsub.s32 3, %v58_v4 }
   0xf   :  { %244 = vmatpush1.bf16.msra.mxu0 %v803_v15  ;;  %285 = vmatpush1.bf16.msra.mxu1 %v804_v16  ;;  %v832_v38 = vld [vmem:[%s1097_s3 + $0xb8] sm:$0xff]   ;;  %v836_v42 = vld [vmem:[%s1097_s3 + $0xb0] sm:$0xff]   ;;  %v839_v45 = vld [vmem:[%s1097_s3 + $0x28] sm:$0xff]  }
  0x10   :  { %245 = vmatprep.subr.bf16.mxu0 %v805_v17  ;;  %286 = vmatprep.subr.bf16.mxu1 %v807_v18  ;;  %v840_v46 = vld [vmem:[%s1097_s3 + $0xa8] sm:$0xff]   ;;  %v841_v47 = vld [vmem:[%s1097_s3 + $0x60] sm:$0xff]   ;;  %v845_v51 = vld [vmem:[%s1097_s3 + $0x58] sm:$0xff]  }
  0x11   :  { %v842_v48 = vld [vmem:[%s1097_s3 + $0xe0] sm:$0xff]   ;;  %v846_v52 = vld [vmem:[%s1097_s3 + $0xd8] sm:$0xff]   ;;  %v849_v55 = vld [vmem:[%s1097_s3 + $0x50] sm:$0xff]  }
  0x12   :  { %v843_v49 = vld [vmem:[%s1097_s3 + $0x20] sm:$0xff]   ;;  %v847_v53 = vld [vmem:[%s1097_s3 + $0x18] sm:$0xff]   ;;  %v850_v56 = vld [vmem:[%s1097_s3 + $0xd0] sm:$0xff]  }
  0x13   :  { %246 = vmatpush1.bf16.msra.mxu0 %v809_v19  ;;  %287 = vmatpush1.bf16.msra.mxu1 %v810_v20  ;;  %v844_v50 = vld [vmem:[%s1097_s3 + $0xa0] sm:$0xff]   ;;  %v848_v54 = vld [vmem:[%s1097_s3 + $0x98] sm:$0xff]   ;;  %v851_v57 = vld [vmem:[%s1097_s3 + $0x10] sm:$0xff]  }
  0x14   :  { %247 = vmatprep.subr.bf16.mxu0 %v811_v21  ;;  %288 = vmatprep.subr.bf16.mxu1 %v813_v22  ;;  %v852_v58 = vld [vmem:[%s1097_s3 + $0x90] sm:$0xff]   ;;  %v853_v59 = vld [vmem:[%s1097_s3 + $0x48] sm:$0xff]   ;;  %v857_v63 = vld [vmem:[%s1097_s3 + $0x40] sm:$0xff]  }
  0x15   :  { %v854_v60 = vld [vmem:[%s1097_s3 + $0xc8] sm:$0xff]   ;;  %v858_v0 = vld [vmem:[%s1097_s3 + $0xc0] sm:$0xff]  }
  0x16   :  { %v855_v61 = vld [vmem:[%s1097_s3 + $0x8] sm:$0xff]   ;;  %v859_v1 = vld [vmem:[%s1097_s3] sm:$0xff]  }
  0x17   :  { %248 = vmatpush1.bf16.msra.mxu0 %v815_v23  ;;  %289 = vmatpush1.bf16.msra.mxu1 %v816_v24  ;;  %v856_v62 = vld [vmem:[%s1097_s3 + $0x88] sm:$0xff]   ;;  %v860_v2 = vld [vmem:[%s1097_s3 + $0x80] sm:$0xff]  }
  0x18   :  { %249 = vmatprep.subr.bf16.mxu0 %v817_v25  ;;  %290 = vmatprep.subr.bf16.mxu1 %v819_v26  ;;  %v55_v7 = vld [vmem:[%s1099_s2] sm:$0xf] }
  0x19   :  { %v68_v10 = vrot.slane %v55_v7, %v67_v5  ;;  %v60_v11 = vrot.slane %v55_v7, %v59_v6  ;;  %v64_v12 = vrot.slane %v55_v7, %v63_v8  ;;  %v72_v13 = vrot.slane %v55_v7, %v71_v9 }
  0x1b   :  { %250 = vmatpush1.bf16.msra.mxu0 %v821_v27  ;;  %291 = vmatpush1.bf16.msra.mxu1 %v822_v28 }
  0x1c   :  { %251 = vmatprep.subr.bf16.mxu0 %v823_v29  ;;  %292 = vmatprep.subr.bf16.mxu1 %v825_v30 }
  0x1f   :  { %252 = vmatpush1.bf16.msra.mxu0 %v827_v31  ;;  %293 = vmatpush1.bf16.msra.mxu1 %v828_v32  ;;  %v703_v32 = vld [vmem:[%s1100_s4] ss:$0 sm:$0xff] }
  0x20   :  { %736 = vmatprep.subr.bf16.mxu0 %v829_v34  ;;  %758 = vmatprep.subr.bf16.mxu1 %v830_v35 }
  0x22   :  { %270 = vmatmul.mubr.bf16.vlgmr.msra.gmra.mxu0 %v22_v37  ;;  %311 = vmatmul.mubr.bf16.vlgmr.msra.gmra.mxu1 %v22_v37 }
  0x23   :  { %737 = vmatpush3.bf16.msra.mxu0 %v831_v36  ;;  %759 = vmatpush3.bf16.msra.mxu1 %v832_v38 }
  0x24   :  { %738 = vmatprep.subr.bf16.mxu0 %v833_v39  ;;  %760 = vmatprep.subr.bf16.mxu1 %v834_v40 }
  0x27   :  { %739 = vmatpush3.bf16.msra.mxu0 %v835_v41  ;;  %761 = vmatpush3.bf16.msra.mxu1 %v836_v42 }
  0x28   :  { %740 = vmatprep.subr.bf16.mxu0 %v837_v43  ;;  %762 = vmatprep.subr.bf16.mxu1 %v838_v44 }
  0x2b   :  { %741 = vmatpush3.bf16.msra.mxu0 %v839_v45  ;;  %763 = vmatpush3.bf16.msra.mxu1 %v840_v46 }
  0x2c   :  { %742 = vmatprep.subr.bf16.mxu0 %v841_v47  ;;  %764 = vmatprep.subr.bf16.mxu1 %v842_v48 }
  0x2f   :  { %743 = vmatpush3.bf16.msra.mxu0 %v843_v49  ;;  %765 = vmatpush3.bf16.msra.mxu1 %v844_v50 }
  0x30   :  { %744 = vmatprep.subr.bf16.mxu0 %v845_v51  ;;  %766 = vmatprep.subr.bf16.mxu1 %v846_v52 }
  0x33   :  { %745 = vmatpush3.bf16.msra.mxu0 %v847_v53  ;;  %767 = vmatpush3.bf16.msra.mxu1 %v848_v54 }
  0x34   :  { %746 = vmatprep.subr.bf16.mxu0 %v849_v55  ;;  %768 = vmatprep.subr.bf16.mxu1 %v850_v56 }
  0x37   :  { %747 = vmatpush3.bf16.msra.mxu0 %v851_v57  ;;  %769 = vmatpush3.bf16.msra.mxu1 %v852_v58 }
  0x38   :  { %748 = vmatprep.subr.bf16.mxu0 %v853_v59  ;;  %770 = vmatprep.subr.bf16.mxu1 %v854_v60 }
  0x3b   :  { %749 = vmatpush3.bf16.msra.mxu0 %v855_v61  ;;  %771 = vmatpush3.bf16.msra.mxu1 %v856_v62 }
  0x3c   :  { %750 = vmatprep.subr.bf16.mxu0 %v857_v63  ;;  %772 = vmatprep.subr.bf16.mxu1 %v858_v0 }
  0x3f   :  { %751 = vmatpush3.bf16.msra.mxu0 %v859_v1  ;;  %773 = vmatpush3.bf16.msra.mxu1 %v860_v2 }
  0xe2   :  { %v271_v14 = vpop.f32.mrf.mxu0  ;;  %v312_v15 = vpop.f32.mrf.mxu1 }
  0xe3   :  { %v313_v16 = vadd.f32 %v312_v15, %v68_v10  ;;  %v272_v17 = vadd.f32 %v271_v14, %v60_v11 }
  0xe4   :  { %v273_v18 = vpop.f32.mrf.mxu0  ;;  %v314_v19 = vpop.f32.mrf.mxu1 }
  0xe5   :  { %v274_v20 = vadd.f32 %v273_v18, %v64_v12  ;;  %v315_v21 = vadd.f32 %v314_v19, %v72_v13  ;;  %v321_v22 = vpack.c.bf16 %v313_v16, %v313_v16  ;;  %v319_v27 = vpack.c.bf16 %v272_v17, %v272_v17 }
  0xe6   :  { %v275_v23 = vpop.f32.mrf.mxu0  ;;  %v316_v24 = vpop.f32.mrf.mxu1 }
  0xe7   :  { %v320_v25 = vpack.c.bf16 %v274_v20, %v274_v20  ;;  %v322_v26 = vpack.c.bf16 %v315_v21, %v315_v21 }
  0xe8   :  { %v276_v28 = vpop.f32.mrf.mxu0  ;;  %v317_v29 = vpop.f32.mrf.mxu1 }
  0xe9   :  { %618 = vmatprep.mubr.bf16.mxu0 %v320_v25  ;;  %658 = vmatprep.mubr.bf16.mxu1 %v322_v26 }
  0xea   :  { %619 = vmatmul.mubr.bf16.vlgmr.msra.gmra.mxu0 %v319_v27  ;;  %659 = vmatmul.mubr.bf16.vlgmr.msra.gmra.mxu1 %v321_v22 }
 0x1aa   :  { %v752_v30 = vpop.f32.mrf.mxu0  ;;  %v774_v31 = vpop.f32.mrf.mxu1 }
 0x1ac   :  { %v753_v33 = vpop.f32.mrf.mxu0  ;;  %v775_v34 = vpop.f32.mrf.mxu1 }
 0x1ad   :  { %v754_v35 = vadd.f32 %v753_v33, %v752_v30  ;;  %v776_v39 = vadd.f32 %v775_v34, %v774_v31 }
 0x1ae   :  { %v755_v36 = vpop.f32.mrf.mxu0  ;;  %v777_v37 = vpop.f32.mrf.mxu1 }
 0x1af   :  { %v621_v38 = vadd.f32 %v754_v35, %v703_v32 }
 0x1b0   :  { %v756_v40 = vpop.f32.mrf.mxu0  ;;  %v778_v41 = vpop.f32.mrf.mxu1 }
 0x1b1   :  { %v661_v42 = vadd.f32 %v776_v39, %v621_v38 }
 0x1b3   :  { %666 = vst [vmem:[%s1101_s5] sm:$0x3] %v661_v42 }

</bundles_post_ra>
